<compile_context>
chip_gen: v7x
topology: tpu7x:2x2x1
jax: 0.10.0
libtpu: 0.0.40
codegen_flags: <defaults>
</compile_context>

<pallas_src>
import math

import jax
import jax.numpy as jnp
from jax.experimental import pallas as pl
from jax.experimental.pallas import tpu as pltpu


def _round_up(x, m):
    return (x + m - 1) // m * m


def _working_set_bytes(tile_h, *, Wp, Wout_pad, C_pad, Cout_pad, KH, KW,
                       stride, dilation, in_itemsize, out_itemsize,
                       mm_itemsize):
    """Honest per-grid-step VMEM working set for a given row tile height."""
    th_in = (tile_h - 1) * stride + dilation * (KH - 1) + 1
    xbuf = 2 * th_in * Wp * C_pad * in_itemsize                 # manual dbl buf
    obuf = 2 * tile_h * Wout_pad * Cout_pad * out_itemsize      # pipelined out
    wts = 2 * (KH * KW * C_pad * 4 + C_pad * Cout_pad * mm_itemsize
               + C_pad * 4 + Cout_pad * 4)                      # weights+biases
    acc = 2 * min(tile_h * Wout_pad * C_pad * 4, 128 * 1024)    # chunk acc/tmp
    return xbuf + obuf + wts + acc + (1 << 20)                  # headroom


def _choose_tile_h(Hout, row_chunks, ws_fn, band_fn, budget):
    """Divisor of Hout minimizing total halo'd-band HBM traffic within budget.

    band_fn(d) is minimal at d == Hout (one DMA per image, zero halo
    re-fetch), so the whole image is picked whenever it fits VMEM; ties break
    toward larger tiles (fewer grid steps, larger MXU M dim).
    """
    divisors = [d for d in range(1, Hout + 1) if Hout % d == 0]
    constrained = [d for d in divisors if (Hout // d) % row_chunks == 0]
    if constrained:
        divisors = constrained
    fitting = [d for d in divisors if ws_fn(d) <= budget]
    if fitting:
        return min(fitting, key=lambda d: (band_fn(d), -d))
    # Nothing fits the requested budget: fall back to the smallest working set
    # so the kernel still compiles; vmem_limit_bytes is raised to cover it.
    return min(divisors, key=ws_fn)


def _choose_sub_h(tile_h, Wout_pad, C_pad, *, acc_limit_bytes=96 * 1024,
                  max_chunks=8):
    """Row sub-chunk height: live f32 accumulator small, 2..8 chunks per tile."""
    divisors = [d for d in range(1, tile_h + 1) if tile_h % d == 0]
    fitting = [d for d in divisors if d * Wout_pad * C_pad * 4 <= acc_limit_bytes]
    if not fitting:
        return 1
    good = [d for d in fitting if 2 <= tile_h // d <= max_chunks]
    return max(good) if good else max(fitting)


def _make_kernel(*, KH, KW, stride, dilation, tile_h, tile_h_in, sub_h,
                 Wout_pad, depthwise_dtype):
    n_sub = tile_h // sub_h

    def kernel(x_hbm, dww_ref, dwb_ref, pww_ref, pwb_ref, o_ref, xbuf, sem):
        c = pl.program_id(0)            # row chunk (parallel; v7x megacore)
        n = pl.program_id(1)            # image index
        t = pl.program_id(2)            # row tile within the chunk
        num_n = pl.num_programs(1)
        num_t = pl.num_programs(2)

        # Double-buffer slot indexed by the global (per-chunk) step so the
        # DMA chain runs uninterrupted across image boundaries.
        slot = (n * num_t + t) % 2

        def band_copy(img, tile_idx, s):
            # Halo'd input row band for output rows [tile_idx*tile_h, +tile_h).
            row0 = tile_idx * (tile_h * stride)
            return pltpu.make_async_copy(
                x_hbm.at[img, pl.ds(row0, tile_h_in)],
                xbuf.at[s],
                sem.at[s])

        cur_tile = c * num_t + t

        # Prime the chain once per row chunk (its very first grid step).
        @pl.when(jnp.logical_and(n == 0, t == 0))
        def _():
            band_copy(n, cur_tile, slot).start()

        # Prefetch the next band -- next tile of this image, or first tile of
        # the next image -- into the other slot while we compute this one.
        within_image = t + 1 < num_t
        has_next = jnp.logical_or(within_image, n + 1 < num_n)
        next_img = jnp.where(within_image, n, n + 1)
        next_tile = jnp.where(within_image, cur_tile + 1, c * num_t)

        @pl.when(has_next)
        def _():
            band_copy(next_img, next_tile, 1 - slot).start()

        # Wait for the current tile's halo'd input band.
        band_copy(n, cur_tile, slot).wait()
        xb = xbuf.at[slot]
        C = xbuf.shape[-1]

        # Per-tap depthwise weights read as lane-dense rows of a (KH*KW, C)
        # slab (no sub-tile sublane extraction out of a (3,3,C) block).
        w_taps = [dww_ref[i, :].astype(depthwise_dtype) for i in range(KH * KW)]
        dw_bias = dwb_ref[0, :]                                   # f32
        pw = pww_ref[...]                                         # matmul dtype
        pw_bias = pwb_ref[0, :]                                   # f32

        # Row sub-chunks: the depthwise (VPU) chain of chunk k+1 is independent
        # of the pointwise (MXU) chain of chunk k, so the unrolled loop lets
        # the scheduler overlap VPU and MXU work, and the live accumulator
        # stays per-chunk (no per-tile VMEM-spilling accumulator).
        for s_i in range(n_sub):
            r0 = s_i * sub_h
            acc = jnp.zeros((sub_h, Wout_pad, C), depthwise_dtype)
            for kh in range(KH):
                h0 = r0 * stride + kh * dilation
                for kw in range(KW):
                    w0 = kw * dilation
                    if stride == 1:
                        xs = xb[pl.ds(h0, sub_h), pl.ds(w0, Wout_pad), :]
                    else:
                        # TODO(synk): stride > 1 (strided sublane loads) is
                        # untested on TPU; ASPP / decoder convs use stride 1.
                        xs = xb[pl.ds(h0, sub_h, stride),
                                pl.ds(w0, Wout_pad, stride), :]
                    acc = acc + xs.astype(depthwise_dtype) * w_taps[kh * KW + kw]
            acc = acc.astype(jnp.float32) + dw_bias

            # Pointwise 1x1 conv on the MXU with f32 accumulation.  Wout_pad is
            # a multiple of 8 and C a multiple of 128, so these reshapes do not
            # cross (8,128) tile boundaries (layout-free).
            flat = acc.reshape(sub_h * Wout_pad, C).astype(pw.dtype)
            out = jnp.dot(flat, pw, preferred_element_type=jnp.float32)
            out = out + pw_bias
            o_ref[0, pl.ds(r0, sub_h)] = (
                out.reshape(sub_h, Wout_pad, -1).astype(o_ref.dtype))

    return kernel


def atrous_separable_conv_nhwc(x_nhwc, dw_w, dw_b, pw_w, pw_b, *,
                               stride=1, padding=0, dilation=1,
                               tile_h=None, row_chunks=1,
                               matmul_dtype=jnp.bfloat16,
                               depthwise_dtype=jnp.float32,
                               activation_dtype=None,
                               out_dtype=None,
                               vmem_budget_bytes=40 << 20):
    """Depthwise atrous conv (groups=C) + pointwise 1x1 conv, NHWC layout.

    x_nhwc : (N, H, W, Cin)
    dw_w   : (KH, KW, Cin)   depthwise weights
    dw_b   : (Cin,)          depthwise bias
    pw_w   : (Cin, Cout)     pointwise weights
    pw_b   : (Cout,)         pointwise bias
    returns: (N, Hout, Wout, Cout)

    row_chunks: set to the number of TensorCores (2 on v7x) to keep both cores
    busy at batch 1; harmless elsewhere.  depthwise_dtype=bf16 is a v6e/v7x
    option (keep f32 on v5e).  activation_dtype/out_dtype=bf16 halves band DMA
    and writeback bytes (v5e HBM roofline / v7x VMEM headroom).
    """
    N, H, W, C = x_nhwc.shape
    KH, KW, wc = dw_w.shape
    assert wc == C
    Cout = pw_w.shape[1]

    Hout = (H + 2 * padding - dilation * (KH - 1) - 1) // stride + 1
    Wout = (W + 2 * padding - dilation * (KW - 1) - 1) // stride + 1

    LANE, SUBLANE = 128, 8
    C_pad = _round_up(C, LANE)          # lane-dense channels
    Cout_pad = _round_up(Cout, LANE)
    Wout_pad = _round_up(Wout, SUBLANE)  # sublane-aligned matmul M dim

    if activation_dtype is not None:
        x_nhwc = x_nhwc.astype(activation_dtype)
    if out_dtype is None:
        out_dtype = x_nhwc.dtype

    # Padded input width so that Wout_pad output columns have valid windows.
    Wp = (Wout_pad - 1) * stride + dilation * (KW - 1) + 1
    extra_w = Wp - (W + 2 * padding)
    assert extra_w >= 0

    # TODO(synk): spatial zero-padding is still a wrapper-side jnp.pad pass
    # over the activation (one extra HBM read+write of the input); doing it
    # in-kernel via clamped band DMAs + halo zero-fill would remove it.
    x = jnp.pad(x_nhwc, ((0, 0), (padding, padding),
                         (padding, padding + extra_w), (0, C_pad - C)))

    dw_w_p = jnp.pad(dw_w, ((0, 0), (0, 0), (0, C_pad - C))).reshape(
        KH * KW, C_pad)
    dw_b_p = jnp.pad(dw_b, (0, C_pad - C)).astype(jnp.float32).reshape(1, C_pad)
    pw_w_p = jnp.pad(pw_w, ((0, C_pad - C), (0, Cout_pad - Cout)))
    pw_w_p = pw_w_p.astype(matmul_dtype)        # bf16 MXU operands, f32 accum
    pw_b_p = jnp.pad(pw_b, (0, Cout_pad - Cout)).astype(jnp.float32).reshape(
        1, Cout_pad)

    in_itemsize = x.dtype.itemsize
    out_itemsize = jnp.dtype(out_dtype).itemsize
    mm_itemsize = jnp.dtype(matmul_dtype).itemsize

    def ws_fn(th):
        return _working_set_bytes(
            th, Wp=Wp, Wout_pad=Wout_pad, C_pad=C_pad, Cout_pad=Cout_pad,
            KH=KH, KW=KW, stride=stride, dilation=dilation,
            in_itemsize=in_itemsize, out_itemsize=out_itemsize,
            mm_itemsize=mm_itemsize)

    def band_fn(th):
        th_in = (th - 1) * stride + dilation * (KH - 1) + 1
        return (Hout // th) * th_in * Wp * C_pad * in_itemsize

    if tile_h is None:
        tile_h = _choose_tile_h(Hout, row_chunks, ws_fn, band_fn,
                                vmem_budget_bytes)
    assert Hout % tile_h == 0, (Hout, tile_h)
    num_tiles = Hout // tile_h
    row_chunks = math.gcd(row_chunks, num_tiles)
    tiles_per_chunk = num_tiles // row_chunks
    tile_h_in = (tile_h - 1) * stride + dilation * (KH - 1) + 1   # halo'd band
    sub_h = _choose_sub_h(tile_h, Wout_pad, C_pad)

    # Raise the scoped-VMEM limit to cover the estimated working set (default
    # scoped limit is only 16/32 MiB) while staying under v7x's 64 MiB/TC of
    # physical VMEM (v5e/v6e have 128 MiB and could go higher).
    vmem_limit = int(min(max(ws_fn(tile_h) + (4 << 20), 32 << 20), 64 << 20))

    kernel = _make_kernel(KH=KH, KW=KW, stride=stride, dilation=dilation,
                          tile_h=tile_h, tile_h_in=tile_h_in, sub_h=sub_h,
                          Wout_pad=Wout_pad, depthwise_dtype=depthwise_dtype)

    out = pl.pallas_call(
        kernel,
        out_shape=jax.ShapeDtypeStruct((N, Hout, Wout_pad, Cout_pad),
                                       out_dtype),
        grid_spec=pltpu.PrefetchScalarGridSpec(
            num_scalar_prefetch=0,
            # (row-chunk, image, row-tile): the row-chunk axis is "parallel"
            # so batch-1 inference can use both TensorCores on v7x; image and
            # tile axes carry the manual DMA double-buffer chain (the chain
            # prefetches across image boundaries, so it must stay sequential).
            grid=(row_chunks, N, tiles_per_chunk),
            in_specs=[
                pl.BlockSpec(memory_space=pl.ANY),             # x stays in HBM
                pl.BlockSpec((KH * KW, C_pad), lambda c, n, t: (0, 0)),
                pl.BlockSpec((1, C_pad), lambda c, n, t: (0, 0)),
                pl.BlockSpec((C_pad, Cout_pad), lambda c, n, t: (0, 0)),
                pl.BlockSpec((1, Cout_pad), lambda c, n, t: (0, 0)),
            ],
            out_specs=pl.BlockSpec(
                (1, tile_h, Wout_pad, Cout_pad),
                lambda c, n, t, T=tiles_per_chunk: (n, c * T + t, 0, 0)),
            scratch_shapes=[
                pltpu.VMEM((2, tile_h_in, Wp, C_pad), x.dtype),  # input bands
                pltpu.SemaphoreType.DMA((2,)),
            ],
        ),
        compiler_params=pltpu.CompilerParams(
            dimension_semantics=("parallel", "arbitrary", "arbitrary"),
            vmem_limit_bytes=vmem_limit),
    )(x, dw_w_p, dw_b_p, pw_w_p, pw_b_p)

    if Wout_pad != Wout or Cout_pad != Cout:
        out = out[:, :, :Wout, :Cout]
    return out


def atrous_separable_conv(x_nchw, dw_w, dw_b, pw_w, pw_b, *, stride=1,
                          padding=0, dilation=1, **kwargs):
    """PyTorch-layout (NCHW) convenience wrapper (demo glue only)."""
    x_nhwc = jnp.transpose(x_nchw, (0, 2, 3, 1))
    out = atrous_separable_conv_nhwc(x_nhwc, dw_w, dw_b, pw_w, pw_b,
                                     stride=stride, padding=padding,
                                     dilation=dilation, **kwargs)
    return jnp.transpose(out, (0, 3, 1, 2))


def _reference(x_nchw, dw_w, dw_b, pw_w, pw_b, *, stride, padding, dilation):
    """Plain-JAX reference using lax.conv_general_dilated (NCHW, like PyTorch)."""
    C = x_nchw.shape[1]
    dw_oihw = jnp.transpose(dw_w, (2, 0, 1))[:, None, :, :]
    y = jax.lax.conv_general_dilated(
        x_nchw, dw_oihw,
        window_strides=(stride, stride),
        padding=((padding, padding), (padding, padding)),
        rhs_dilation=(dilation, dilation),
        feature_group_count=C,
        dimension_numbers=("NCHW", "OIHW", "NCHW"))
    y = y + dw_b[None, :, None, None]
    pw_oihw = jnp.transpose(pw_w, (1, 0))[:, :, None, None]
    z = jax.lax.conv_general_dilated(
        y, pw_oihw, window_strides=(1, 1), padding="VALID",
        dimension_numbers=("NCHW", "OIHW", "NCHW"))
    return z + pw_b[None, :, None, None]


if __name__ == "__main__":
    K, stride, padding, dilation = 3, 1, 2, 2

    def make_inputs(N, Cin, Cout, H, W):
        kx, kdw, kdb, kpw, kpb = jax.random.split(jax.random.PRNGKey(0), 5)
        x = jax.random.normal(kx, (N, Cin, H, W), jnp.float32)
        dw_std = (2.0 / (K * K)) ** 0.5
        dw_w = dw_std * jax.random.normal(kdw, (K, K, Cin), jnp.float32)
        dw_b = 0.01 * jax.random.normal(kdb, (Cin,), jnp.float32)
        pw_std = (2.0 / Cin) ** 0.5
        pw_w = pw_std * jax.random.normal(kpw, (Cin, Cout), jnp.float32)
        pw_b = 0.01 * jax.random.normal(kpb, (Cout,), jnp.float32)
        return x, dw_w, dw_b, pw_w, pw_b

    # 1) Default performance path (bf16 MXU operands, f32 accumulation) at the
    #    harness shapes; whole-image tile (zero halo re-fetch), 2 sub-chunks.
    x, dw_w, dw_b, pw_w, pw_b = make_inputs(2, 4, 8, 16, 16)
    out_bf16 = atrous_separable_conv(x, dw_w, dw_b, pw_w, pw_b,
                                     stride=stride, padding=padding,
                                     dilation=dilation)
    out_bf16 = jax.block_until_ready(out_bf16)
    ref = _reference(x, dw_w, dw_b, pw_w, pw_b,
                     stride=stride, padding=padding, dilation=dilation)
    assert out_bf16.shape == ref.shape, (out_bf16.shape, ref.shape)
    # Tolerance reflects bf16 rounding of the matmul operands only
    # (accumulation stays f32).
    assert jnp.allclose(out_bf16, ref, atol=1e-1, rtol=5e-2), \
        float(jnp.max(jnp.abs(out_bf16 - ref)))

    # 2) Exactness / machinery check: odd spatial size (Wout not a multiple of
    #    8 -> padded-width path), explicit row tiling (halo band DMA chain +
    #    cross-image prefetch), f32 matmul operands -> tight tolerance.
    x2, dw_w2, dw_b2, pw_w2, pw_b2 = make_inputs(2, 4, 8, 15, 13)
    out_f32 = atrous_separable_conv(x2, dw_w2, dw_b2, pw_w2, pw_b2,
                                    stride=stride, padding=padding,
                                    dilation=dilation, tile_h=5,
                                    matmul_dtype=jnp.float32)
    out_f32 = jax.block_until_ready(out_f32)
    ref2 = _reference(x2, dw_w2, dw_b2, pw_w2, pw_b2,
                      stride=stride, padding=padding, dilation=dilation)
    assert out_f32.shape == ref2.shape, (out_f32.shape, ref2.shape)
    assert jnp.allclose(out_f32, ref2, atol=1e-4, rtol=1e-4), \
        float(jnp.max(jnp.abs(out_f32 - ref2)))

    print("KERNEL_OK")
</pallas_src>

<mosaic_0001>
module attributes {stable_mosaic.version = 11 : i64} {
  func.func @kernel(%arg0: i32, %arg1: i32, %arg2: i32, %arg3: memref<2x20x20x128xf32, #tpu.memory_space<any>>, %arg4: memref<9x128xf32, #tpu.memory_space<vmem>>, %arg5: memref<1x128xf32, #tpu.memory_space<vmem>>, %arg6: memref<128x128xbf16, #tpu.memory_space<vmem>>, %arg7: memref<1x128xf32, #tpu.memory_space<vmem>>, %arg8: memref<1x16x16x128xf32, #tpu.memory_space<vmem>>, %arg9: memref<2x20x20x128xf32, #tpu.memory_space<vmem>>, %arg10: memref<2x!tpu.dma_semaphore, #tpu.memory_space<semaphore_mem>>) attributes {dimension_semantics = [#tpu.dimension_semantics<parallel>, #tpu.dimension_semantics<arbitrary>, #tpu.dimension_semantics<arbitrary>], iteration_bounds = array<i64: 1, 2, 1>, scalar_prefetch = 0 : i64, scratch_operands = 2 : i64, tpu.core_type = #tpu.core_type<tc>, window_params = [{}, {pipeline_mode = #tpu.pipeline_mode<synchronous>, transform_indices = @transform_1, window_bounds = array<i64: 9, 128>}, {pipeline_mode = #tpu.pipeline_mode<synchronous>, transform_indices = @transform_2, window_bounds = array<i64: 1, 128>}, {pipeline_mode = #tpu.pipeline_mode<synchronous>, transform_indices = @transform_3, window_bounds = array<i64: 128, 128>}, {pipeline_mode = #tpu.pipeline_mode<synchronous>, transform_indices = @transform_4, window_bounds = array<i64: 1, 128>}, {transform_indices = @transform_5, window_bounds = array<i64: 1, 16, 16, 128>}]} {
    %c1_i32 = arith.constant 1 : i32
    %0 = arith.muli %arg1, %c1_i32 : i32
    %1 = arith.addi %0, %arg2 : i32
    %c2_i32 = arith.constant 2 : i32
    %c0_i32 = arith.constant 0 : i32
    %2 = arith.cmpi eq, %c2_i32, %c0_i32 : i32
    %c1_i32_0 = arith.constant 1 : i32
    %3 = arith.select %2, %c1_i32_0, %c2_i32 : i32
    %4 = arith.remsi %1, %3 : i32
    %c0_i32_1 = arith.constant 0 : i32
    %5 = arith.cmpi ne, %4, %c0_i32_1 : i32
    %c0_i32_2 = arith.constant 0 : i32
    %6 = arith.cmpi slt, %4, %c0_i32_2 : i32
    %c0_i32_3 = arith.constant 0 : i32
    %7 = arith.cmpi slt, %3, %c0_i32_3 : i32
    %8 = arith.xori %6, %7 : i1
    %9 = arith.andi %8, %5 : i1
    %10 = arith.addi %4, %3 : i32
    %11 = arith.select %9, %10, %4 : i32
    %c1_i32_4 = arith.constant 1 : i32
    %12 = arith.muli %arg0, %c1_i32_4 : i32
    %13 = arith.addi %12, %arg2 : i32
    %c0_i32_5 = arith.constant 0 : i32
    %14 = arith.cmpi eq, %arg1, %c0_i32_5 : i32
    %c0_i32_6 = arith.constant 0 : i32
    %15 = arith.cmpi eq, %arg2, %c0_i32_6 : i32
    %16 = arith.andi %14, %15 : i1
    %17 = arith.extui %16 : i1 to i32
    %c0_i32_7 = arith.constant 0 : i32
    %18 = arith.cmpi ne, %17, %c0_i32_7 : i32
    scf.if %18 {
      %c16_i32_153 = arith.constant 16 : i32
      %215 = arith.muli %13, %c16_i32_153 : i32
      %c0_i32_154 = arith.constant 0 : i32
      %c0_i32_155 = arith.constant 0 : i32
      %216 = tpu.memref_slice %arg3[%arg1, %215, %c0_i32_154, %c0_i32_155] : memref<2x20x20x128xf32, #tpu.memory_space<any>> -> memref<1x20x20x128xf32, #tpu.memory_space<any>>
      %217 = tpu.memref_squeeze %216 : memref<1x20x20x128xf32, #tpu.memory_space<any>> -> memref<20x20x128xf32, #tpu.memory_space<any>>
      %c0_i32_156 = arith.constant 0 : i32
      %c0_i32_157 = arith.constant 0 : i32
      %c0_i32_158 = arith.constant 0 : i32
      %218 = tpu.memref_slice %arg9[%11, %c0_i32_156, %c0_i32_157, %c0_i32_158] : memref<2x20x20x128xf32, #tpu.memory_space<vmem>> -> memref<1x20x20x128xf32, #tpu.memory_space<vmem>>
      %219 = tpu.memref_squeeze %218 : memref<1x20x20x128xf32, #tpu.memory_space<vmem>> -> memref<20x20x128xf32, #tpu.memory_space<vmem>>
      %220 = tpu.memref_slice %arg10[%11] : memref<2x!tpu.dma_semaphore, #tpu.memory_space<semaphore_mem>> -> memref<1x!tpu.dma_semaphore, #tpu.memory_space<semaphore_mem>>
      %221 = tpu.memref_squeeze %220 : memref<1x!tpu.dma_semaphore, #tpu.memory_space<semaphore_mem>> -> memref<!tpu.dma_semaphore, #tpu.memory_space<semaphore_mem>>
      tpu.enqueue_dma source(%217 : memref<20x20x128xf32, #tpu.memory_space<any>>) target(%219 : memref<20x20x128xf32, #tpu.memory_space<vmem>>) target_semaphore(%221 : memref<!tpu.dma_semaphore, #tpu.memory_space<semaphore_mem>>)
    } else {
    }
    %c1_i32_8 = arith.constant 1 : i32
    %19 = arith.addi %arg2, %c1_i32_8 : i32
    %c1_i32_9 = arith.constant 1 : i32
    %20 = arith.cmpi slt, %19, %c1_i32_9 : i32
    %c1_i32_10 = arith.constant 1 : i32
    %21 = arith.addi %arg1, %c1_i32_10 : i32
    %c2_i32_11 = arith.constant 2 : i32
    %22 = arith.cmpi slt, %21, %c2_i32_11 : i32
    %23 = arith.ori %20, %22 : i1
    %c1_i32_12 = arith.constant 1 : i32
    %24 = arith.addi %arg1, %c1_i32_12 : i32
    %25 = arith.select %20, %arg1, %24 : i32
    %c1_i32_13 = arith.constant 1 : i32
    %26 = arith.addi %13, %c1_i32_13 : i32
    %c1_i32_14 = arith.constant 1 : i32
    %27 = arith.muli %arg0, %c1_i32_14 : i32
    %28 = arith.select %20, %26, %27 : i32
    %29 = arith.extui %23 : i1 to i32
    %c0_i32_15 = arith.constant 0 : i32
    %30 = arith.cmpi ne, %29, %c0_i32_15 : i32
    scf.if %30 {
      %c1_i32_153 = arith.constant 1 : i32
      %215 = arith.subi %c1_i32_153, %11 : i32
      %c16_i32_154 = arith.constant 16 : i32
      %216 = arith.muli %28, %c16_i32_154 : i32
      %c0_i32_155 = arith.constant 0 : i32
      %c0_i32_156 = arith.constant 0 : i32
      %217 = tpu.memref_slice %arg3[%25, %216, %c0_i32_155, %c0_i32_156] : memref<2x20x20x128xf32, #tpu.memory_space<any>> -> memref<1x20x20x128xf32, #tpu.memory_space<any>>
      %218 = tpu.memref_squeeze %217 : memref<1x20x20x128xf32, #tpu.memory_space<any>> -> memref<20x20x128xf32, #tpu.memory_space<any>>
      %c0_i32_157 = arith.constant 0 : i32
      %c0_i32_158 = arith.constant 0 : i32
      %c0_i32_159 = arith.constant 0 : i32
      %219 = tpu.memref_slice %arg9[%215, %c0_i32_157, %c0_i32_158, %c0_i32_159] : memref<2x20x20x128xf32, #tpu.memory_space<vmem>> -> memref<1x20x20x128xf32, #tpu.memory_space<vmem>>
      %220 = tpu.memref_squeeze %219 : memref<1x20x20x128xf32, #tpu.memory_space<vmem>> -> memref<20x20x128xf32, #tpu.memory_space<vmem>>
      %221 = tpu.memref_slice %arg10[%215] : memref<2x!tpu.dma_semaphore, #tpu.memory_space<semaphore_mem>> -> memref<1x!tpu.dma_semaphore, #tpu.memory_space<semaphore_mem>>
      %222 = tpu.memref_squeeze %221 : memref<1x!tpu.dma_semaphore, #tpu.memory_space<semaphore_mem>> -> memref<!tpu.dma_semaphore, #tpu.memory_space<semaphore_mem>>
      tpu.enqueue_dma source(%218 : memref<20x20x128xf32, #tpu.memory_space<any>>) target(%220 : memref<20x20x128xf32, #tpu.memory_space<vmem>>) target_semaphore(%222 : memref<!tpu.dma_semaphore, #tpu.memory_space<semaphore_mem>>)
    } else {
    }
    %c16_i32 = arith.constant 16 : i32
    %31 = arith.muli %13, %c16_i32 : i32
    %c0_i32_16 = arith.constant 0 : i32
    %c0_i32_17 = arith.constant 0 : i32
    %32 = tpu.memref_slice %arg3[%arg1, %31, %c0_i32_16, %c0_i32_17] : memref<2x20x20x128xf32, #tpu.memory_space<any>> -> memref<1x20x20x128xf32, #tpu.memory_space<any>>
    %33 = tpu.memref_squeeze %32 : memref<1x20x20x128xf32, #tpu.memory_space<any>> -> memref<20x20x128xf32, #tpu.memory_space<any>>
    %c0_i32_18 = arith.constant 0 : i32
    %c0_i32_19 = arith.constant 0 : i32
    %c0_i32_20 = arith.constant 0 : i32
    %34 = tpu.memref_slice %arg9[%11, %c0_i32_18, %c0_i32_19, %c0_i32_20] : memref<2x20x20x128xf32, #tpu.memory_space<vmem>> -> memref<1x20x20x128xf32, #tpu.memory_space<vmem>>
    %35 = tpu.memref_squeeze %34 : memref<1x20x20x128xf32, #tpu.memory_space<vmem>> -> memref<20x20x128xf32, #tpu.memory_space<vmem>>
    %36 = tpu.memref_slice %arg10[%11] : memref<2x!tpu.dma_semaphore, #tpu.memory_space<semaphore_mem>> -> memref<1x!tpu.dma_semaphore, #tpu.memory_space<semaphore_mem>>
    %37 = tpu.memref_squeeze %36 : memref<1x!tpu.dma_semaphore, #tpu.memory_space<semaphore_mem>> -> memref<!tpu.dma_semaphore, #tpu.memory_space<semaphore_mem>>
    tpu.wait_dma2 semaphore(%37 : memref<!tpu.dma_semaphore, #tpu.memory_space<semaphore_mem>>) src(%33 : memref<20x20x128xf32, #tpu.memory_space<any>>) dst(%35 : memref<20x20x128xf32, #tpu.memory_space<vmem>>)
    %c0 = arith.constant 0 : index
    %c0_21 = arith.constant 0 : index
    %38 = vector.load %arg4[%c0, %c0_21] : memref<9x128xf32, #tpu.memory_space<vmem>>, vector<1x128xf32>
    %39 = vector.shape_cast %38 : vector<1x128xf32> to vector<128xf32>
    %c1 = arith.constant 1 : index
    %c0_22 = arith.constant 0 : index
    %40 = vector.load %arg4[%c1, %c0_22] : memref<9x128xf32, #tpu.memory_space<vmem>>, vector<1x128xf32>
    %41 = vector.shape_cast %40 : vector<1x128xf32> to vector<128xf32>
    %c2 = arith.constant 2 : index
    %c0_23 = arith.constant 0 : index
    %42 = vector.load %arg4[%c2, %c0_23] : memref<9x128xf32, #tpu.memory_space<vmem>>, vector<1x128xf32>
    %43 = vector.shape_cast %42 : vector<1x128xf32> to vector<128xf32>
    %c3 = arith.constant 3 : index
    %c0_24 = arith.constant 0 : index
    %44 = vector.load %arg4[%c3, %c0_24] : memref<9x128xf32, #tpu.memory_space<vmem>>, vector<1x128xf32>
    %45 = vector.shape_cast %44 : vector<1x128xf32> to vector<128xf32>
    %c4 = arith.constant 4 : index
    %c0_25 = arith.constant 0 : index
    %46 = vector.load %arg4[%c4, %c0_25] : memref<9x128xf32, #tpu.memory_space<vmem>>, vector<1x128xf32>
    %47 = vector.shape_cast %46 : vector<1x128xf32> to vector<128xf32>
    %c5 = arith.constant 5 : index
    %c0_26 = arith.constant 0 : index
    %48 = vector.load %arg4[%c5, %c0_26] : memref<9x128xf32, #tpu.memory_space<vmem>>, vector<1x128xf32>
    %49 = vector.shape_cast %48 : vector<1x128xf32> to vector<128xf32>
    %c6 = arith.constant 6 : index
    %c0_27 = arith.constant 0 : index
    %50 = vector.load %arg4[%c6, %c0_27] : memref<9x128xf32, #tpu.memory_space<vmem>>, vector<1x128xf32>
    %51 = vector.shape_cast %50 : vector<1x128xf32> to vector<128xf32>
    %c7 = arith.constant 7 : index
    %c0_28 = arith.constant 0 : index
    %52 = vector.load %arg4[%c7, %c0_28] : memref<9x128xf32, #tpu.memory_space<vmem>>, vector<1x128xf32>
    %53 = vector.shape_cast %52 : vector<1x128xf32> to vector<128xf32>
    %c8 = arith.constant 8 : index
    %c0_29 = arith.constant 0 : index
    %54 = vector.load %arg4[%c8, %c0_29] : memref<9x128xf32, #tpu.memory_space<vmem>>, vector<1x128xf32>
    %55 = vector.shape_cast %54 : vector<1x128xf32> to vector<128xf32>
    %c0_30 = arith.constant 0 : index
    %c0_31 = arith.constant 0 : index
    %56 = vector.load %arg5[%c0_30, %c0_31] : memref<1x128xf32, #tpu.memory_space<vmem>>, vector<1x128xf32>
    %57 = vector.shape_cast %56 : vector<1x128xf32> to vector<128xf32>
    %c0_32 = arith.constant 0 : index
    %c0_33 = arith.constant 0 : index
    %58 = vector.load %arg6[%c0_32, %c0_33] : memref<128x128xbf16, #tpu.memory_space<vmem>>, vector<128x128xbf16>
    %c0_34 = arith.constant 0 : index
    %c0_35 = arith.constant 0 : index
    %59 = vector.load %arg7[%c0_34, %c0_35] : memref<1x128xf32, #tpu.memory_space<vmem>>, vector<1x128xf32>
    %60 = vector.shape_cast %59 : vector<1x128xf32> to vector<128xf32>
    %cst = arith.constant 0.000000e+00 : f32
    %61 = vector.broadcast %cst : f32 to vector<8x16x128xf32>
    %c0_i32_36 = arith.constant 0 : i32
    %c0_i32_37 = arith.constant 0 : i32
    %c0_i32_38 = arith.constant 0 : i32
    %62 = tpu.memref_slice %arg9[%11, %c0_i32_36, %c0_i32_37, %c0_i32_38] : memref<2x20x20x128xf32, #tpu.memory_space<vmem>> -> memref<1x20x20x128xf32, #tpu.memory_space<vmem>>
    %63 = tpu.memref_squeeze %62 : memref<1x20x20x128xf32, #tpu.memory_space<vmem>> -> memref<20x20x128xf32, #tpu.memory_space<vmem>>
    %c0_39 = arith.constant 0 : index
    %c0_40 = arith.constant 0 : index
    %c0_41 = arith.constant 0 : index
    %64 = vector.load %63[%c0_39, %c0_40, %c0_41] : memref<20x20x128xf32, #tpu.memory_space<vmem>>, vector<8x16x128xf32>
    %65 = vector.shape_cast %39 : vector<128xf32> to vector<1x1x128xf32>
    %66 = vector.broadcast %65 : vector<1x1x128xf32> to vector<8x16x128xf32>
    %67 = arith.mulf %64, %66 : vector<8x16x128xf32>
    %68 = arith.addf %61, %67 : vector<8x16x128xf32>
    %c0_i32_42 = arith.constant 0 : i32
    %c0_i32_43 = arith.constant 0 : i32
    %c0_i32_44 = arith.constant 0 : i32
    %69 = tpu.memref_slice %arg9[%11, %c0_i32_42, %c0_i32_43, %c0_i32_44] : memref<2x20x20x128xf32, #tpu.memory_space<vmem>> -> memref<1x20x20x128xf32, #tpu.memory_space<vmem>>
    %70 = tpu.memref_squeeze %69 : memref<1x20x20x128xf32, #tpu.memory_space<vmem>> -> memref<20x20x128xf32, #tpu.memory_space<vmem>>
    %c0_45 = arith.constant 0 : index
    %c2_46 = arith.constant 2 : index
    %c0_47 = arith.constant 0 : index
    %71 = vector.load %70[%c0_45, %c2_46, %c0_47] : memref<20x20x128xf32, #tpu.memory_space<vmem>>, vector<8x16x128xf32>
    %72 = vector.shape_cast %41 : vector<128xf32> to vector<1x1x128xf32>
    %73 = vector.broadcast %72 : vector<1x1x128xf32> to vector<8x16x128xf32>
    %74 = arith.mulf %71, %73 : vector<8x16x128xf32>
    %75 = arith.addf %68, %74 : vector<8x16x128xf32>
    %c0_i32_48 = arith.constant 0 : i32
    %c0_i32_49 = arith.constant 0 : i32
    %c0_i32_50 = arith.constant 0 : i32
    %76 = tpu.memref_slice %arg9[%11, %c0_i32_48, %c0_i32_49, %c0_i32_50] : memref<2x20x20x128xf32, #tpu.memory_space<vmem>> -> memref<1x20x20x128xf32, #tpu.memory_space<vmem>>
    %77 = tpu.memref_squeeze %76 : memref<1x20x20x128xf32, #tpu.memory_space<vmem>> -> memref<20x20x128xf32, #tpu.memory_space<vmem>>
    %c0_51 = arith.constant 0 : index
    %c4_52 = arith.constant 4 : index
    %c0_53 = arith.constant 0 : index
    %78 = vector.load %77[%c0_51, %c4_52, %c0_53] : memref<20x20x128xf32, #tpu.memory_space<vmem>>, vector<8x16x128xf32>
    %79 = vector.shape_cast %43 : vector<128xf32> to vector<1x1x128xf32>
    %80 = vector.broadcast %79 : vector<1x1x128xf32> to vector<8x16x128xf32>
    %81 = arith.mulf %78, %80 : vector<8x16x128xf32>
    %82 = arith.addf %75, %81 : vector<8x16x128xf32>
    %c0_i32_54 = arith.constant 0 : i32
    %c0_i32_55 = arith.constant 0 : i32
    %c0_i32_56 = arith.constant 0 : i32
    %83 = tpu.memref_slice %arg9[%11, %c0_i32_54, %c0_i32_55, %c0_i32_56] : memref<2x20x20x128xf32, #tpu.memory_space<vmem>> -> memref<1x20x20x128xf32, #tpu.memory_space<vmem>>
    %84 = tpu.memref_squeeze %83 : memref<1x20x20x128xf32, #tpu.memory_space<vmem>> -> memref<20x20x128xf32, #tpu.memory_space<vmem>>
    %c2_57 = arith.constant 2 : index
    %c0_58 = arith.constant 0 : index
    %c0_59 = arith.constant 0 : index
    %85 = vector.load %84[%c2_57, %c0_58, %c0_59] : memref<20x20x128xf32, #tpu.memory_space<vmem>>, vector<8x16x128xf32>
    %86 = vector.shape_cast %45 : vector<128xf32> to vector<1x1x128xf32>
    %87 = vector.broadcast %86 : vector<1x1x128xf32> to vector<8x16x128xf32>
    %88 = arith.mulf %85, %87 : vector<8x16x128xf32>
    %89 = arith.addf %82, %88 : vector<8x16x128xf32>
    %c0_i32_60 = arith.constant 0 : i32
    %c0_i32_61 = arith.constant 0 : i32
    %c0_i32_62 = arith.constant 0 : i32
    %90 = tpu.memref_slice %arg9[%11, %c0_i32_60, %c0_i32_61, %c0_i32_62] : memref<2x20x20x128xf32, #tpu.memory_space<vmem>> -> memref<1x20x20x128xf32, #tpu.memory_space<vmem>>
    %91 = tpu.memref_squeeze %90 : memref<1x20x20x128xf32, #tpu.memory_space<vmem>> -> memref<20x20x128xf32, #tpu.memory_space<vmem>>
    %c2_63 = arith.constant 2 : index
    %c2_64 = arith.constant 2 : index
    %c0_65 = arith.constant 0 : index
    %92 = vector.load %91[%c2_63, %c2_64, %c0_65] : memref<20x20x128xf32, #tpu.memory_space<vmem>>, vector<8x16x128xf32>
    %93 = vector.shape_cast %47 : vector<128xf32> to vector<1x1x128xf32>
    %94 = vector.broadcast %93 : vector<1x1x128xf32> to vector<8x16x128xf32>
    %95 = arith.mulf %92, %94 : vector<8x16x128xf32>
    %96 = arith.addf %89, %95 : vector<8x16x128xf32>
    %c0_i32_66 = arith.constant 0 : i32
    %c0_i32_67 = arith.constant 0 : i32
    %c0_i32_68 = arith.constant 0 : i32
    %97 = tpu.memref_slice %arg9[%11, %c0_i32_66, %c0_i32_67, %c0_i32_68] : memref<2x20x20x128xf32, #tpu.memory_space<vmem>> -> memref<1x20x20x128xf32, #tpu.memory_space<vmem>>
    %98 = tpu.memref_squeeze %97 : memref<1x20x20x128xf32, #tpu.memory_space<vmem>> -> memref<20x20x128xf32, #tpu.memory_space<vmem>>
    %c2_69 = arith.constant 2 : index
    %c4_70 = arith.constant 4 : index
    %c0_71 = arith.constant 0 : index
    %99 = vector.load %98[%c2_69, %c4_70, %c0_71] : memref<20x20x128xf32, #tpu.memory_space<vmem>>, vector<8x16x128xf32>
    %100 = vector.shape_cast %49 : vector<128xf32> to vector<1x1x128xf32>
    %101 = vector.broadcast %100 : vector<1x1x128xf32> to vector<8x16x128xf32>
    %102 = arith.mulf %99, %101 : vector<8x16x128xf32>
    %103 = arith.addf %96, %102 : vector<8x16x128xf32>
    %c0_i32_72 = arith.constant 0 : i32
    %c0_i32_73 = arith.constant 0 : i32
    %c0_i32_74 = arith.constant 0 : i32
    %104 = tpu.memref_slice %arg9[%11, %c0_i32_72, %c0_i32_73, %c0_i32_74] : memref<2x20x20x128xf32, #tpu.memory_space<vmem>> -> memref<1x20x20x128xf32, #tpu.memory_space<vmem>>
    %105 = tpu.memref_squeeze %104 : memref<1x20x20x128xf32, #tpu.memory_space<vmem>> -> memref<20x20x128xf32, #tpu.memory_space<vmem>>
    %c4_75 = arith.constant 4 : index
    %c0_76 = arith.constant 0 : index
    %c0_77 = arith.constant 0 : index
    %106 = vector.load %105[%c4_75, %c0_76, %c0_77] : memref<20x20x128xf32, #tpu.memory_space<vmem>>, vector<8x16x128xf32>
    %107 = vector.shape_cast %51 : vector<128xf32> to vector<1x1x128xf32>
    %108 = vector.broadcast %107 : vector<1x1x128xf32> to vector<8x16x128xf32>
    %109 = arith.mulf %106, %108 : vector<8x16x128xf32>
    %110 = arith.addf %103, %109 : vector<8x16x128xf32>
    %c0_i32_78 = arith.constant 0 : i32
    %c0_i32_79 = arith.constant 0 : i32
    %c0_i32_80 = arith.constant 0 : i32
    %111 = tpu.memref_slice %arg9[%11, %c0_i32_78, %c0_i32_79, %c0_i32_80] : memref<2x20x20x128xf32, #tpu.memory_space<vmem>> -> memref<1x20x20x128xf32, #tpu.memory_space<vmem>>
    %112 = tpu.memref_squeeze %111 : memref<1x20x20x128xf32, #tpu.memory_space<vmem>> -> memref<20x20x128xf32, #tpu.memory_space<vmem>>
    %c4_81 = arith.constant 4 : index
    %c2_82 = arith.constant 2 : index
    %c0_83 = arith.constant 0 : index
    %113 = vector.load %112[%c4_81, %c2_82, %c0_83] : memref<20x20x128xf32, #tpu.memory_space<vmem>>, vector<8x16x128xf32>
    %114 = vector.shape_cast %53 : vector<128xf32> to vector<1x1x128xf32>
    %115 = vector.broadcast %114 : vector<1x1x128xf32> to vector<8x16x128xf32>
    %116 = arith.mulf %113, %115 : vector<8x16x128xf32>
    %117 = arith.addf %110, %116 : vector<8x16x128xf32>
    %c0_i32_84 = arith.constant 0 : i32
    %c0_i32_85 = arith.constant 0 : i32
    %c0_i32_86 = arith.constant 0 : i32
    %118 = tpu.memref_slice %arg9[%11, %c0_i32_84, %c0_i32_85, %c0_i32_86] : memref<2x20x20x128xf32, #tpu.memory_space<vmem>> -> memref<1x20x20x128xf32, #tpu.memory_space<vmem>>
    %119 = tpu.memref_squeeze %118 : memref<1x20x20x128xf32, #tpu.memory_space<vmem>> -> memref<20x20x128xf32, #tpu.memory_space<vmem>>
    %c4_87 = arith.constant 4 : index
    %c4_88 = arith.constant 4 : index
    %c0_89 = arith.constant 0 : index
    %120 = vector.load %119[%c4_87, %c4_88, %c0_89] : memref<20x20x128xf32, #tpu.memory_space<vmem>>, vector<8x16x128xf32>
    %121 = vector.shape_cast %55 : vector<128xf32> to vector<1x1x128xf32>
    %122 = vector.broadcast %121 : vector<1x1x128xf32> to vector<8x16x128xf32>
    %123 = arith.mulf %120, %122 : vector<8x16x128xf32>
    %124 = arith.addf %117, %123 : vector<8x16x128xf32>
    %125 = vector.shape_cast %57 : vector<128xf32> to vector<1x1x128xf32>
    %126 = vector.broadcast %125 : vector<1x1x128xf32> to vector<8x16x128xf32>
    %127 = arith.addf %124, %126 : vector<8x16x128xf32>
    %128 = vector.shape_cast %127 : vector<8x16x128xf32> to vector<128x128xf32>
    %129 = arith.truncf %128 : vector<128x128xf32> to vector<128x128xbf16>
    %cst_90 = arith.constant dense<0.000000e+00> : vector<128x128xf32>
    %130 = tpu.matmul %129, %58, %cst_90 {dimension_numbers = #tpu.dot_dimension_numbers<[1], [0], [0], [1], [0, 0, 1, 1], [], []>} : vector<128x128xbf16>, vector<128x128xbf16>, vector<128x128xf32> -> vector<128x128xf32>
    %131 = vector.shape_cast %60 : vector<128xf32> to vector<1x128xf32>
    %132 = vector.broadcast %131 : vector<1x128xf32> to vector<128x128xf32>
    %133 = arith.addf %130, %132 : vector<128x128xf32>
    %134 = vector.shape_cast %133 : vector<128x128xf32> to vector<8x16x128xf32>
    %c0_91 = arith.constant 0 : index
    %c0_92 = arith.constant 0 : index
    %c0_93 = arith.constant 0 : index
    %c0_94 = arith.constant 0 : index
    %135 = vector.load %arg8[%c0_91, %c0_92, %c0_93, %c0_94] : memref<1x16x16x128xf32, #tpu.memory_space<vmem>>, vector<1x8x16x128xf32>
    %136 = vector.shape_cast %135 : vector<1x8x16x128xf32> to vector<8x16x128xf32>
    %137 = vector.shape_cast %134 : vector<8x16x128xf32> to vector<1x8x16x128xf32>
    tpu.vector_store %arg8[%c0_91, %c0_92, %c0_93, %c0_94], %137 {strides = array<i32>} : memref<1x16x16x128xf32, #tpu.memory_space<vmem>>, vector<1x8x16x128xf32>,
    %cst_95 = arith.constant 0.000000e+00 : f32
    %138 = vector.broadcast %cst_95 : f32 to vector<8x16x128xf32>
    %c0_i32_96 = arith.constant 0 : i32
    %c0_i32_97 = arith.constant 0 : i32
    %c0_i32_98 = arith.constant 0 : i32
    %139 = tpu.memref_slice %arg9[%11, %c0_i32_96, %c0_i32_97, %c0_i32_98] : memref<2x20x20x128xf32, #tpu.memory_space<vmem>> -> memref<1x20x20x128xf32, #tpu.memory_space<vmem>>
    %140 = tpu.memref_squeeze %139 : memref<1x20x20x128xf32, #tpu.memory_space<vmem>> -> memref<20x20x128xf32, #tpu.memory_space<vmem>>
    %c8_99 = arith.constant 8 : index
    %c0_100 = arith.constant 0 : index
    %c0_101 = arith.constant 0 : index
    %141 = vector.load %140[%c8_99, %c0_100, %c0_101] : memref<20x20x128xf32, #tpu.memory_space<vmem>>, vector<8x16x128xf32>
    %142 = vector.shape_cast %39 : vector<128xf32> to vector<1x1x128xf32>
    %143 = vector.broadcast %142 : vector<1x1x128xf32> to vector<8x16x128xf32>
    %144 = arith.mulf %141, %143 : vector<8x16x128xf32>
    %145 = arith.addf %138, %144 : vector<8x16x128xf32>
    %c0_i32_102 = arith.constant 0 : i32
    %c0_i32_103 = arith.constant 0 : i32
    %c0_i32_104 = arith.constant 0 : i32
    %146 = tpu.memref_slice %arg9[%11, %c0_i32_102, %c0_i32_103, %c0_i32_104] : memref<2x20x20x128xf32, #tpu.memory_space<vmem>> -> memref<1x20x20x128xf32, #tpu.memory_space<vmem>>
    %147 = tpu.memref_squeeze %146 : memref<1x20x20x128xf32, #tpu.memory_space<vmem>> -> memref<20x20x128xf32, #tpu.memory_space<vmem>>
    %c8_105 = arith.constant 8 : index
    %c2_106 = arith.constant 2 : index
    %c0_107 = arith.constant 0 : index
    %148 = vector.load %147[%c8_105, %c2_106, %c0_107] : memref<20x20x128xf32, #tpu.memory_space<vmem>>, vector<8x16x128xf32>
    %149 = vector.shape_cast %41 : vector<128xf32> to vector<1x1x128xf32>
    %150 = vector.broadcast %149 : vector<1x1x128xf32> to vector<8x16x128xf32>
    %151 = arith.mulf %148, %150 : vector<8x16x128xf32>
    %152 = arith.addf %145, %151 : vector<8x16x128xf32>
    %c0_i32_108 = arith.constant 0 : i32
    %c0_i32_109 = arith.constant 0 : i32
    %c0_i32_110 = arith.constant 0 : i32
    %153 = tpu.memref_slice %arg9[%11, %c0_i32_108, %c0_i32_109, %c0_i32_110] : memref<2x20x20x128xf32, #tpu.memory_space<vmem>> -> memref<1x20x20x128xf32, #tpu.memory_space<vmem>>
    %154 = tpu.memref_squeeze %153 : memref<1x20x20x128xf32, #tpu.memory_space<vmem>> -> memref<20x20x128xf32, #tpu.memory_space<vmem>>
    %c8_111 = arith.constant 8 : index
    %c4_112 = arith.constant 4 : index
    %c0_113 = arith.constant 0 : index
    %155 = vector.load %154[%c8_111, %c4_112, %c0_113] : memref<20x20x128xf32, #tpu.memory_space<vmem>>, vector<8x16x128xf32>
    %156 = vector.shape_cast %43 : vector<128xf32> to vector<1x1x128xf32>
    %157 = vector.broadcast %156 : vector<1x1x128xf32> to vector<8x16x128xf32>
    %158 = arith.mulf %155, %157 : vector<8x16x128xf32>
    %159 = arith.addf %152, %158 : vector<8x16x128xf32>
    %c0_i32_114 = arith.constant 0 : i32
    %c0_i32_115 = arith.constant 0 : i32
    %c0_i32_116 = arith.constant 0 : i32
    %160 = tpu.memref_slice %arg9[%11, %c0_i32_114, %c0_i32_115, %c0_i32_116] : memref<2x20x20x128xf32, #tpu.memory_space<vmem>> -> memref<1x20x20x128xf32, #tpu.memory_space<vmem>>
    %161 = tpu.memref_squeeze %160 : memref<1x20x20x128xf32, #tpu.memory_space<vmem>> -> memref<20x20x128xf32, #tpu.memory_space<vmem>>
    %c10 = arith.constant 10 : index
    %c0_117 = arith.constant 0 : index
    %c0_118 = arith.constant 0 : index
    %162 = vector.load %161[%c10, %c0_117, %c0_118] : memref<20x20x128xf32, #tpu.memory_space<vmem>>, vector<8x16x128xf32>
    %163 = vector.shape_cast %45 : vector<128xf32> to vector<1x1x128xf32>
    %164 = vector.broadcast %163 : vector<1x1x128xf32> to vector<8x16x128xf32>
    %165 = arith.mulf %162, %164 : vector<8x16x128xf32>
    %166 = arith.addf %159, %165 : vector<8x16x128xf32>
    %c0_i32_119 = arith.constant 0 : i32
    %c0_i32_120 = arith.constant 0 : i32
    %c0_i32_121 = arith.constant 0 : i32
    %167 = tpu.memref_slice %arg9[%11, %c0_i32_119, %c0_i32_120, %c0_i32_121] : memref<2x20x20x128xf32, #tpu.memory_space<vmem>> -> memref<1x20x20x128xf32, #tpu.memory_space<vmem>>
    %168 = tpu.memref_squeeze %167 : memref<1x20x20x128xf32, #tpu.memory_space<vmem>> -> memref<20x20x128xf32, #tpu.memory_space<vmem>>
    %c10_122 = arith.constant 10 : index
    %c2_123 = arith.constant 2 : index
    %c0_124 = arith.constant 0 : index
    %169 = vector.load %168[%c10_122, %c2_123, %c0_124] : memref<20x20x128xf32, #tpu.memory_space<vmem>>, vector<8x16x128xf32>
    %170 = vector.shape_cast %47 : vector<128xf32> to vector<1x1x128xf32>
    %171 = vector.broadcast %170 : vector<1x1x128xf32> to vector<8x16x128xf32>
    %172 = arith.mulf %169, %171 : vector<8x16x128xf32>
    %173 = arith.addf %166, %172 : vector<8x16x128xf32>
    %c0_i32_125 = arith.constant 0 : i32
    %c0_i32_126 = arith.constant 0 : i32
    %c0_i32_127 = arith.constant 0 : i32
    %174 = tpu.memref_slice %arg9[%11, %c0_i32_125, %c0_i32_126, %c0_i32_127] : memref<2x20x20x128xf32, #tpu.memory_space<vmem>> -> memref<1x20x20x128xf32, #tpu.memory_space<vmem>>
    %175 = tpu.memref_squeeze %174 : memref<1x20x20x128xf32, #tpu.memory_space<vmem>> -> memref<20x20x128xf32, #tpu.memory_space<vmem>>
    %c10_128 = arith.constant 10 : index
    %c4_129 = arith.constant 4 : index
    %c0_130 = arith.constant 0 : index
    %176 = vector.load %175[%c10_128, %c4_129, %c0_130] : memref<20x20x128xf32, #tpu.memory_space<vmem>>, vector<8x16x128xf32>
    %177 = vector.shape_cast %49 : vector<128xf32> to vector<1x1x128xf32>
    %178 = vector.broadcast %177 : vector<1x1x128xf32> to vector<8x16x128xf32>
    %179 = arith.mulf %176, %178 : vector<8x16x128xf32>
    %180 = arith.addf %173, %179 : vector<8x16x128xf32>
    %c0_i32_131 = arith.constant 0 : i32
    %c0_i32_132 = arith.constant 0 : i32
    %c0_i32_133 = arith.constant 0 : i32
    %181 = tpu.memref_slice %arg9[%11, %c0_i32_131, %c0_i32_132, %c0_i32_133] : memref<2x20x20x128xf32, #tpu.memory_space<vmem>> -> memref<1x20x20x128xf32, #tpu.memory_space<vmem>>
    %182 = tpu.memref_squeeze %181 : memref<1x20x20x128xf32, #tpu.memory_space<vmem>> -> memref<20x20x128xf32, #tpu.memory_space<vmem>>
    %c12 = arith.constant 12 : index
    %c0_134 = arith.constant 0 : index
    %c0_135 = arith.constant 0 : index
    %183 = vector.load %182[%c12, %c0_134, %c0_135] : memref<20x20x128xf32, #tpu.memory_space<vmem>>, vector<8x16x128xf32>
    %184 = vector.shape_cast %51 : vector<128xf32> to vector<1x1x128xf32>
    %185 = vector.broadcast %184 : vector<1x1x128xf32> to vector<8x16x128xf32>
    %186 = arith.mulf %183, %185 : vector<8x16x128xf32>
    %187 = arith.addf %180, %186 : vector<8x16x128xf32>
    %c0_i32_136 = arith.constant 0 : i32
    %c0_i32_137 = arith.constant 0 : i32
    %c0_i32_138 = arith.constant 0 : i32
    %188 = tpu.memref_slice %arg9[%11, %c0_i32_136, %c0_i32_137, %c0_i32_138] : memref<2x20x20x128xf32, #tpu.memory_space<vmem>> -> memref<1x20x20x128xf32, #tpu.memory_space<vmem>>
    %189 = tpu.memref_squeeze %188 : memref<1x20x20x128xf32, #tpu.memory_space<vmem>> -> memref<20x20x128xf32, #tpu.memory_space<vmem>>
    %c12_139 = arith.constant 12 : index
    %c2_140 = arith.constant 2 : index
    %c0_141 = arith.constant 0 : index
    %190 = vector.load %189[%c12_139, %c2_140, %c0_141] : memref<20x20x128xf32, #tpu.memory_space<vmem>>, vector<8x16x128xf32>
    %191 = vector.shape_cast %53 : vector<128xf32> to vector<1x1x128xf32>
    %192 = vector.broadcast %191 : vector<1x1x128xf32> to vector<8x16x128xf32>
    %193 = arith.mulf %190, %192 : vector<8x16x128xf32>
    %194 = arith.addf %187, %193 : vector<8x16x128xf32>
    %c0_i32_142 = arith.constant 0 : i32
    %c0_i32_143 = arith.constant 0 : i32
    %c0_i32_144 = arith.constant 0 : i32
    %195 = tpu.memref_slice %arg9[%11, %c0_i32_142, %c0_i32_143, %c0_i32_144] : memref<2x20x20x128xf32, #tpu.memory_space<vmem>> -> memref<1x20x20x128xf32, #tpu.memory_space<vmem>>
    %196 = tpu.memref_squeeze %195 : memref<1x20x20x128xf32, #tpu.memory_space<vmem>> -> memref<20x20x128xf32, #tpu.memory_space<vmem>>
    %c12_145 = arith.constant 12 : index
    %c4_146 = arith.constant 4 : index
    %c0_147 = arith.constant 0 : index
    %197 = vector.load %196[%c12_145, %c4_146, %c0_147] : memref<20x20x128xf32, #tpu.memory_space<vmem>>, vector<8x16x128xf32>
    %198 = vector.shape_cast %55 : vector<128xf32> to vector<1x1x128xf32>
    %199 = vector.broadcast %198 : vector<1x1x128xf32> to vector<8x16x128xf32>
    %200 = arith.mulf %197, %199 : vector<8x16x128xf32>
    %201 = arith.addf %194, %200 : vector<8x16x128xf32>
    %202 = vector.shape_cast %57 : vector<128xf32> to vector<1x1x128xf32>
    %203 = vector.broadcast %202 : vector<1x1x128xf32> to vector<8x16x128xf32>
    %204 = arith.addf %201, %203 : vector<8x16x128xf32>
    %205 = vector.shape_cast %204 : vector<8x16x128xf32> to vector<128x128xf32>
    %206 = arith.truncf %205 : vector<128x128xf32> to vector<128x128xbf16>
    %cst_148 = arith.constant dense<0.000000e+00> : vector<128x128xf32>
    %207 = tpu.matmul %206, %58, %cst_148 {dimension_numbers = #tpu.dot_dimension_numbers<[1], [0], [0], [1], [0, 0, 1, 1], [], []>} : vector<128x128xbf16>, vector<128x128xbf16>, vector<128x128xf32> -> vector<128x128xf32>
    %208 = vector.shape_cast %60 : vector<128xf32> to vector<1x128xf32>
    %209 = vector.broadcast %208 : vector<1x128xf32> to vector<128x128xf32>
    %210 = arith.addf %207, %209 : vector<128x128xf32>
    %211 = vector.shape_cast %210 : vector<128x128xf32> to vector<8x16x128xf32>
    %c0_149 = arith.constant 0 : index
    %c8_150 = arith.constant 8 : index
    %c0_151 = arith.constant 0 : index
    %c0_152 = arith.constant 0 : index
    %212 = vector.load %arg8[%c0_149, %c8_150, %c0_151, %c0_152] : memref<1x16x16x128xf32, #tpu.memory_space<vmem>>, vector<1x8x16x128xf32>
    %213 = vector.shape_cast %212 : vector<1x8x16x128xf32> to vector<8x16x128xf32>
    %214 = vector.shape_cast %211 : vector<8x16x128xf32> to vector<1x8x16x128xf32>
    tpu.vector_store %arg8[%c0_149, %c8_150, %c0_151, %c0_152], %214 {strides = array<i32>} : memref<1x16x16x128xf32, #tpu.memory_space<vmem>>, vector<1x8x16x128xf32>,
    return
  }
  func.func @transform_1(%arg0: i32, %arg1: i32, %arg2: i32) -> (i32, i32) {
    %c0_i32 = arith.constant 0 : i32
    %c0_i32_0 = arith.constant 0 : i32
    %c0_i32_1 = arith.constant 0 : i32
    return %c0_i32, %c0_i32_0 : i32, i32
  }
  func.func @transform_2(%arg0: i32, %arg1: i32, %arg2: i32) -> (i32, i32) {
    %c0_i32 = arith.constant 0 : i32
    %c0_i32_0 = arith.constant 0 : i32
    %c0_i32_1 = arith.constant 0 : i32
    return %c0_i32, %c0_i32_0 : i32, i32
  }
  func.func @transform_3(%arg0: i32, %arg1: i32, %arg2: i32) -> (i32, i32) {
    %c0_i32 = arith.constant 0 : i32
    %c0_i32_0 = arith.constant 0 : i32
    %c0_i32_1 = arith.constant 0 : i32
    return %c0_i32, %c0_i32_0 : i32, i32
  }
  func.func @transform_4(%arg0: i32, %arg1: i32, %arg2: i32) -> (i32, i32) {
    %c0_i32 = arith.constant 0 : i32
    %c0_i32_0 = arith.constant 0 : i32
    %c0_i32_1 = arith.constant 0 : i32
    return %c0_i32, %c0_i32_0 : i32, i32
  }
  func.func @transform_5(%arg0: i32, %arg1: i32, %arg2: i32) -> (i32, i32, i32, i32) {
    %c1_i32 = arith.constant 1 : i32
    %0 = arith.muli %arg0, %c1_i32 : i32
    %1 = arith.addi %0, %arg2 : i32
    %c0_i32 = arith.constant 0 : i32
    %c0_i32_0 = arith.constant 0 : i32
    %c0_i32_1 = arith.constant 0 : i32
    return %arg1, %1, %c0_i32, %c0_i32_0 : i32, i32, i32, i32
  }
}

</mosaic_0001>

<bundles_post_ra>
// kernel: tpu_custom_call.1
= control target key start
LH: loop header
LB: loop body
LE: loop exit
PB: predicated region body
PF: predicated region fallthrough
CT: control target
= control target key end

     0   :  { %10 = vsyncpa [#allocation5], 0  ;;  %s4239_s0 = inlined_call_operand.vmem [shape: f32[2,20,20,128], index: 0, kind: input, shape index: {}]   ;;  %s4240_s1 = inlined_call_operand.vmem [shape: f32[9,128], index: 1, kind: input, shape index: {}]   ;;  %s4241_s2 = inlined_call_operand.vmem [shape: f32[1,128], index: 2, kind: input, shape index: {}]   ;;  %s4242_s3 = inlined_call_operand.vmem [shape: bf16[128,128], index: 3, kind: input, shape index: {}]   ;;  %s4243_s4 = inlined_call_operand.vmem [shape: f32[1,128], index: 4, kind: input, shape index: {}]   ;;  %s4244_s5 = inlined_call_operand.hbm [shape: f32[2,16,16,128], index: 5, kind: output, shape index: {}]  }
   0x1   :  { %12 = vsyncpa [#allocation5 + $0x1], 0  ;;  %s2743_s18 = smov 0   ;;  %s2745_s19 = smov 0  }
   0x2   :  { %s2747_s20 = smov 0   ;;  %s2749_s21 = smov 0  }
   0x3   :  { %s2751_s22 = smov 0   ;;  %s2753_s23 = smov 0  }
   0x4 LB: > { %s2083_s24 = sadd.s32 4294967295, %s2708_s23   ;;  %s2084_s25 = sadd.s32 4294967294, %s2708_s23   ;;  %s2708_s23 = sphi %s2753_s23, %s18_s23   ;;  %s2704_s22 = sphi %s2751_s22, %s4430_s22   ;;  %s2700_s21 = sphi %s2749_s21, %s4429_s21   ;;  %s2696_s20 = sphi %s2747_s20, %s4428_s20   ;;  %s2692_s19 = sphi %s2745_s19, %s4427_s19   ;;  %s2688_s18 = sphi %s2743_s18, %s4426_s18  }
   0x5   : > { %s33_s26 = sadd.s32 1, %s2704_s22  ;;  %s132_s27 = sadd.s32 1, %s2696_s20 }
   0x6   : > { %p35_p0 = scmp.ge.s32.totalorder %s33_s26, 2  ;;  %p142_p1 = scmp.ne.s32.totalorder %s2696_s20, %s2692_s19 }
   0x7   : > { %p143_p2 = scmp.eq.s32.totalorder %s2083_s24, 1  ;;  %p148_p3 = scmp.ne.s32.totalorder %s2692_s19, %s2688_s18 }
   0x8   : > { %s4432_s26 = smov (%p35_p0, %s33_s26), 0  ;;  %p149_p5 = scmp.eq.s32.totalorder %s2084_s25, 1 }
   0x9   : > { %p2783_p4 = por %p143_p2, %p142_p1  ;;  %s127_s29 = ssub.s32 %s2704_s22, %s4432_s26 }
   0xa   : > { %p2086_p6 = scmp.ge.s32.totalorder %s2708_s23, 1  ;;  %p130_p7 = scmp.eq.s32.totalorder %s127_s29, 0 }
   0xb   : > { %p2790_p8 = por %p149_p5, %p148_p3  ;;  %p179_p9 = scmp.lt.s32.totalorder %s2708_s23, 3 }
   0xc   : > { %s2796_s6 = scalar_select %p130_p7, %s2696_s20, %s132_s27  }
   0xd   : > { %p180_p10 = pnand %p2086_p6, %p179_p9 }
   0xf   : > { %183 = sbr.rel (%p180_p10) target bundleno = 513 (0x201), region = 36 }
  0x16   : > { %s197_s7 = sand.u32 1, %s2692_s19   ;;  %p204_p11 = scmp.lt.s32.totalorder %s2700_s21, 0 }
  0x17   : > { %s2087_s8 = sshll.u32 %s197_s7, 8  ;;  %s205_s9 = ssub.s32 0, %s2700_s21 }
  0x18   : > { %s2088_s10 = smin.u32 %s2700_s21, %s205_s9  ;;  %p217_p12 = scmp.eq.s32.totalorder %s2700_s21, 0 }
  0x19   : > { %s207_s11 = sand.u32 1, %s2088_s10   ;;  %s2807_s14 = scalar_lea.vmem [#allocation4], %s2087_s8 }
  0x1a   : > { %s208_s12 = ssub.s32 0, %s207_s11  ;;  %222 = sbr.rel (!%p217_p12) target bundleno = 65 (0x41), region = 40 }
  0x1b   : > { %s4434_s12 = smov (!%p204_p11, %s208_s12), %s207_s11  ;;  %s225_s15 = smul.u32 (%p217_p12), 480, %s2700_s21 }
  0x1c   : > { %p2090_p13 = scmp.lt.s32.totalorder %s4434_s12, 0  ;;  %s214_s13 = sadd.s32 2, %s4434_s12 }
  0x1d   : > { %s2814_s25 = scalar_lea.vmem (%p217_p12), %s4239_s0, %s225_s15 }
  0x1e   : > { %s4436_s13 = smov (!%p2090_p13, %s214_s13), %s4434_s12  ;;  %v306_v0 = vld [vmem:[%s2814_s25] sm:$0xff] (%p217_p12)  ;;  %v308_v1 = vld [vmem:[%s2814_s25 + $0x8] sm:$0xff] (%p217_p12)  ;;  %v310_v2 = vld [vmem:[%s2814_s25 + $0x18] sm:$0xff] (%p217_p12) }
  0x1f   : > { %s228_s16 = smul.u32 (%p217_p12), 480, %s4436_s13  ;;  %v312_v3 = vld [vmem:[%s2814_s25 + $0x20] sm:$0xff] (%p217_p12)  ;;  %v314_v4 = vld [vmem:[%s2814_s25 + $0x30] sm:$0xff] (%p217_p12)  ;;  %v316_v5 = vld [vmem:[%s2814_s25 + $0x38] sm:$0xff] (%p217_p12)  ;;  %s230_s29 = scalar_lea.sflag (%p217_p12), [#allocation3], %s4436_s13 }
  0x20   : > { %v318_v6 = vld [vmem:[%s2814_s25 + $0x48] sm:$0xff] (%p217_p12)  ;;  %v320_v7 = vld [vmem:[%s2814_s25 + $0x50] sm:$0xff] (%p217_p12)  ;;  %v322_v8 = vld [vmem:[%s2814_s25 + $0x60] sm:$0xff] (%p217_p12) }
  0x21   : > { %s2819_s27 = scalar_lea.vmem [#allocation2], %s228_s16  ;;  %v324_v9 = vld [vmem:[%s2814_s25 + $0x68] sm:$0xff]  ;;  %v326_v10 = vld [vmem:[%s2814_s25 + $0x78] sm:$0xff]  ;;  %v328_v11 = vld [vmem:[%s2814_s25 + $0x80] sm:$0xff] }
  0x22   : > { %307 = vst [vmem:[%s2819_s27] sm:$0xff] %v306_v0  ;;  %309 = vst [vmem:[%s2819_s27 + $0x8] sm:$0xff] %v308_v1  ;;  %v330_v12 = vld [vmem:[%s2814_s25 + $0x90] sm:$0xff]  ;;  %v332_v13 = vld [vmem:[%s2814_s25 + $0x98] sm:$0xff] }
  0x23   : > { %311 = vst [vmem:[%s2819_s27 + $0x18] sm:$0xff] %v310_v2  ;;  %313 = vst [vmem:[%s2819_s27 + $0x20] sm:$0xff] %v312_v3  ;;  %v334_v14 = vld [vmem:[%s2814_s25 + $0xa8] sm:$0xff]  ;;  %v336_v15 = vld [vmem:[%s2814_s25 + $0xb0] sm:$0xff] }
  0x24   : > { %315 = vst [vmem:[%s2819_s27 + $0x30] sm:$0xff] %v314_v4  ;;  %317 = vst [vmem:[%s2819_s27 + $0x38] sm:$0xff] %v316_v5  ;;  %v338_v16 = vld [vmem:[%s2814_s25 + $0xc0] sm:$0xff]  ;;  %v340_v17 = vld [vmem:[%s2814_s25 + $0xc8] sm:$0xff] }
  0x25   : > { %319 = vst [vmem:[%s2819_s27 + $0x48] sm:$0xff] %v318_v6  ;;  %321 = vst [vmem:[%s2819_s27 + $0x50] sm:$0xff] %v320_v7  ;;  %v342_v18 = vld [vmem:[%s2814_s25 + $0xd8] sm:$0xff]  ;;  %v344_v19 = vld [vmem:[%s2814_s25 + $0xe0] sm:$0xff] }
  0x26   : > { %323 = vst [vmem:[%s2819_s27 + $0x60] sm:$0xff] %v322_v8  ;;  %325 = vst [vmem:[%s2819_s27 + $0x68] sm:$0xff] %v324_v9  ;;  %v346_v20 = vld [vmem:[%s2814_s25 + $0xf0] sm:$0xff]  ;;  %v348_v21 = vld [vmem:[%s2814_s25 + $0xf8] sm:$0xff] }
  0x27   : > { %327 = vst [vmem:[%s2819_s27 + $0x78] sm:$0xff] %v326_v10  ;;  %329 = vst [vmem:[%s2819_s27 + $0x80] sm:$0xff] %v328_v11  ;;  %v350_v22 = vld [vmem:[%s2814_s25 + $0x108] sm:$0xff]  ;;  %v352_v23 = vld [vmem:[%s2814_s25 + $0x110] sm:$0xff] }
  0x28   : > { %331 = vst [vmem:[%s2819_s27 + $0x90] sm:$0xff] %v330_v12  ;;  %333 = vst [vmem:[%s2819_s27 + $0x98] sm:$0xff] %v332_v13  ;;  %v354_v24 = vld [vmem:[%s2814_s25 + $0x120] sm:$0xff]  ;;  %v356_v25 = vld [vmem:[%s2814_s25 + $0x128] sm:$0xff] }
  0x29   : > { %335 = vst [vmem:[%s2819_s27 + $0xa8] sm:$0xff] %v334_v14  ;;  %337 = vst [vmem:[%s2819_s27 + $0xb0] sm:$0xff] %v336_v15  ;;  %v358_v26 = vld [vmem:[%s2814_s25 + $0x138] sm:$0xff]  ;;  %v360_v27 = vld [vmem:[%s2814_s25 + $0x140] sm:$0xff] }
  0x2a   : > { %339 = vst [vmem:[%s2819_s27 + $0xc0] sm:$0xff] %v338_v16  ;;  %341 = vst [vmem:[%s2819_s27 + $0xc8] sm:$0xff] %v340_v17  ;;  %v362_v28 = vld [vmem:[%s2814_s25 + $0x150] sm:$0xff]  ;;  %v364_v29 = vld [vmem:[%s2814_s25 + $0x158] sm:$0xff] }
  0x2b   : > { %343 = vst [vmem:[%s2819_s27 + $0xd8] sm:$0xff] %v342_v18  ;;  %345 = vst [vmem:[%s2819_s27 + $0xe0] sm:$0xff] %v344_v19  ;;  %v366_v30 = vld [vmem:[%s2814_s25 + $0x168] sm:$0xff]  ;;  %v368_v31 = vld [vmem:[%s2814_s25 + $0x170] sm:$0xff] }
  0x2c   : > { %347 = vst [vmem:[%s2819_s27 + $0xf0] sm:$0xff] %v346_v20  ;;  %349 = vst [vmem:[%s2819_s27 + $0xf8] sm:$0xff] %v348_v21  ;;  %v370_v32 = vld [vmem:[%s2814_s25 + $0x180] sm:$0xff]  ;;  %v372_v33 = vld [vmem:[%s2814_s25 + $0x188] sm:$0xff] }
  0x2d   : > { %351 = vst [vmem:[%s2819_s27 + $0x108] sm:$0xff] %v350_v22  ;;  %353 = vst [vmem:[%s2819_s27 + $0x110] sm:$0xff] %v352_v23  ;;  %v374_v34 = vld [vmem:[%s2814_s25 + $0x198] sm:$0xff]  ;;  %v376_v35 = vld [vmem:[%s2814_s25 + $0x1a0] sm:$0xff] }
  0x2e   : > { %355 = vst [vmem:[%s2819_s27 + $0x120] sm:$0xff] %v354_v24  ;;  %357 = vst [vmem:[%s2819_s27 + $0x128] sm:$0xff] %v356_v25  ;;  %v378_v36 = vld [vmem:[%s2814_s25 + $0x1b0] sm:$0xff]  ;;  %v380_v37 = vld [vmem:[%s2814_s25 + $0x1b8] sm:$0xff] }
  0x2f   : > { %359 = vst [vmem:[%s2819_s27 + $0x138] sm:$0xff] %v358_v26  ;;  %361 = vst [vmem:[%s2819_s27 + $0x140] sm:$0xff] %v360_v27  ;;  %v382_v38 = vld [vmem:[%s2814_s25 + $0x1c8] sm:$0xff]  ;;  %v384_v39 = vld [vmem:[%s2814_s25 + $0x1d0] sm:$0xff] }
  0x30   : > { %363 = vst [vmem:[%s2819_s27 + $0x150] sm:$0xff] %v362_v28  ;;  %365 = vst [vmem:[%s2819_s27 + $0x158] sm:$0xff] %v364_v29  ;;  %v2092_v40 = vld [vmem:[%s2814_s25 + $0x10] sm:$0xf]  ;;  %v2094_v41 = vld [vmem:[%s2814_s25 + $0x28] sm:$0xf] }
  0x31   : > { %367 = vst [vmem:[%s2819_s27 + $0x168] sm:$0xff] %v366_v30  ;;  %369 = vst [vmem:[%s2819_s27 + $0x170] sm:$0xff] %v368_v31  ;;  %v2096_v42 = vld [vmem:[%s2814_s25 + $0x40] sm:$0xf]  ;;  %v2098_v43 = vld [vmem:[%s2814_s25 + $0x58] sm:$0xf] }
  0x32   : > { %371 = vst [vmem:[%s2819_s27 + $0x180] sm:$0xff] %v370_v32  ;;  %373 = vst [vmem:[%s2819_s27 + $0x188] sm:$0xff] %v372_v33  ;;  %v2100_v44 = vld [vmem:[%s2814_s25 + $0x70] sm:$0xf]  ;;  %v2102_v45 = vld [vmem:[%s2814_s25 + $0x88] sm:$0xf] }
  0x33   : > { %375 = vst [vmem:[%s2819_s27 + $0x198] sm:$0xff] %v374_v34  ;;  %377 = vst [vmem:[%s2819_s27 + $0x1a0] sm:$0xff] %v376_v35  ;;  %v2104_v46 = vld [vmem:[%s2814_s25 + $0xa0] sm:$0xf]  ;;  %v2106_v47 = vld [vmem:[%s2814_s25 + $0xb8] sm:$0xf] }
  0x34   : > { %379 = vst [vmem:[%s2819_s27 + $0x1b0] sm:$0xff] %v378_v36  ;;  %381 = vst [vmem:[%s2819_s27 + $0x1b8] sm:$0xff] %v380_v37  ;;  %v2108_v48 = vld [vmem:[%s2814_s25 + $0xd0] sm:$0xf]  ;;  %v2110_v49 = vld [vmem:[%s2814_s25 + $0xe8] sm:$0xf] }
  0x35   : > { %383 = vst [vmem:[%s2819_s27 + $0x1c8] sm:$0xff] %v382_v38  ;;  %385 = vst [vmem:[%s2819_s27 + $0x1d0] sm:$0xff] %v384_v39  ;;  %v2112_v50 = vld [vmem:[%s2814_s25 + $0x100] sm:$0xf]  ;;  %v2114_v51 = vld [vmem:[%s2814_s25 + $0x118] sm:$0xf] }
  0x36   : > { %2093 = vst [vmem:[%s2819_s27 + $0x10] sm:$0xf] %v2092_v40  ;;  %2095 = vst [vmem:[%s2819_s27 + $0x28] sm:$0xf] %v2094_v41  ;;  %v2116_v52 = vld [vmem:[%s2814_s25 + $0x130] sm:$0xf] }
  0x37   : > { %2097 = vst [vmem:[%s2819_s27 + $0x40] sm:$0xf] %v2096_v42  ;;  %2099 = vst [vmem:[%s2819_s27 + $0x58] sm:$0xf] %v2098_v43  ;;  %v2118_v53 = vld [vmem:[%s2814_s25 + $0x148] sm:$0xf] }
  0x38   : > { %2101 = vst [vmem:[%s2819_s27 + $0x70] sm:$0xf] %v2100_v44  ;;  %2103 = vst [vmem:[%s2819_s27 + $0x88] sm:$0xf] %v2102_v45  ;;  %v2120_v54 = vld [vmem:[%s2814_s25 + $0x160] sm:$0xf] }
  0x39   : > { %2105 = vst [vmem:[%s2819_s27 + $0xa0] sm:$0xf] %v2104_v46  ;;  %2107 = vst [vmem:[%s2819_s27 + $0xb8] sm:$0xf] %v2106_v47  ;;  %v2122_v55 = vld [vmem:[%s2814_s25 + $0x178] sm:$0xf] }
  0x3a   : > { %2109 = vst [vmem:[%s2819_s27 + $0xd0] sm:$0xf] %v2108_v48  ;;  %2111 = vst [vmem:[%s2819_s27 + $0xe8] sm:$0xf] %v2110_v49  ;;  %v2124_v56 = vld [vmem:[%s2814_s25 + $0x190] sm:$0xf] }
  0x3b   : > { %2113 = vst [vmem:[%s2819_s27 + $0x100] sm:$0xf] %v2112_v50  ;;  %2115 = vst [vmem:[%s2819_s27 + $0x118] sm:$0xf] %v2114_v51  ;;  %v2126_v57 = vld [vmem:[%s2814_s25 + $0x1a8] sm:$0xf] }
  0x3c   : > { %2117 = vst [vmem:[%s2819_s27 + $0x130] sm:$0xf] %v2116_v52  ;;  %2119 = vst [vmem:[%s2819_s27 + $0x148] sm:$0xf] %v2118_v53  ;;  %v2128_v58 = vld [vmem:[%s2814_s25 + $0x1c0] sm:$0xf] }
  0x3d   : > { %2121 = vst [vmem:[%s2819_s27 + $0x160] sm:$0xf] %v2120_v54  ;;  %2123 = vst [vmem:[%s2819_s27 + $0x178] sm:$0xf] %v2122_v55  ;;  %v2130_v59 = vld [vmem:[%s2814_s25 + $0x1d8] sm:$0xf] }
  0x3e   : > { %2125 = vst [vmem:[%s2819_s27 + $0x190] sm:$0xf] %v2124_v56  ;;  %2127 = vst [vmem:[%s2819_s27 + $0x1a8] sm:$0xf] %v2126_v57 }
  0x3f   : > { %2129 = vst [vmem:[%s2819_s27 + $0x1c0] sm:$0xf] %v2128_v58  ;;  %2131 = vst [vmem:[%s2819_s27 + $0x1d8] sm:$0xf] %v2130_v59 }
  0x40   : > { %438 = vsyncadd %s230_s29, 6400 }
  0x41 PF: > { %s441_s8 = sadd.s32 1, %s2700_s21 }
  0x42   : > { %p2132_p0 = scmp.ge.s32.totalorder %s441_s8, 2 }
  0x43   : > { %s450_s9 = ssub.s32 (!%p2132_p0), 1, %s4436_s13  ;;  %s453_s10 = smul.u32 (!%p2132_p0), 480, %s441_s8 }
  0x44   : > { %449 = sbr.rel (%p2132_p0) target bundleno = 105 (0x69), region = 81  ;;  %s458_s24 = scalar_lea.sflag (!%p2132_p0), [#allocation3], %s450_s9 }
  0x45   : > { %s456_s11 = smul.u32 (!%p2132_p0), 480, %s450_s9  ;;  %s2946_s16 = scalar_lea.vmem (!%p2132_p0), %s4239_s0, %s453_s10 }
  0x46   : > { %v534_v60 = vld [vmem:[%s2946_s16] sm:$0xff] (!%p2132_p0)  ;;  %v536_v61 = vld [vmem:[%s2946_s16 + $0x8] sm:$0xff] (!%p2132_p0)  ;;  %v538_v62 = vld [vmem:[%s2946_s16 + $0x18] sm:$0xff] (!%p2132_p0) }
  0x47   : > { %s2951_s17 = scalar_lea.vmem (!%p2132_p0), [#allocation2], %s456_s11  ;;  %v540_v63 = vld [vmem:[%s2946_s16 + $0x20] sm:$0xff] (!%p2132_p0)  ;;  %v542_v0 = vld [vmem:[%s2946_s16 + $0x30] sm:$0xff] (!%p2132_p0)  ;;  %v544_v1 = vld [vmem:[%s2946_s16 + $0x38] sm:$0xff] (!%p2132_p0) }
  0x48   : > { %535 = vst [vmem:[%s2951_s17] sm:$0xff] (!%p2132_p0), %v534_v60  ;;  %537 = vst [vmem:[%s2951_s17 + $0x8] sm:$0xff] (!%p2132_p0), %v536_v61  ;;  %v546_v2 = vld [vmem:[%s2946_s16 + $0x48] sm:$0xff] (!%p2132_p0)  ;;  %v548_v3 = vld [vmem:[%s2946_s16 + $0x50] sm:$0xff] (!%p2132_p0) }
  0x49   : > { %539 = vst [vmem:[%s2951_s17 + $0x18] sm:$0xff] (!%p2132_p0), %v538_v62  ;;  %541 = vst [vmem:[%s2951_s17 + $0x20] sm:$0xff] (!%p2132_p0), %v540_v63  ;;  %v550_v4 = vld [vmem:[%s2946_s16 + $0x60] sm:$0xff] (!%p2132_p0)  ;;  %v552_v5 = vld [vmem:[%s2946_s16 + $0x68] sm:$0xff] (!%p2132_p0) }
  0x4a   : > { %543 = vst [vmem:[%s2951_s17 + $0x30] sm:$0xff] (!%p2132_p0), %v542_v0  ;;  %545 = vst [vmem:[%s2951_s17 + $0x38] sm:$0xff] (!%p2132_p0), %v544_v1  ;;  %v554_v6 = vld [vmem:[%s2946_s16 + $0x78] sm:$0xff] (!%p2132_p0)  ;;  %v556_v7 = vld [vmem:[%s2946_s16 + $0x80] sm:$0xff] (!%p2132_p0) }
  0x4b   : > { %547 = vst [vmem:[%s2951_s17 + $0x48] sm:$0xff] %v546_v2  ;;  %549 = vst [vmem:[%s2951_s17 + $0x50] sm:$0xff] %v548_v3  ;;  %v558_v8 = vld [vmem:[%s2946_s16 + $0x90] sm:$0xff]  ;;  %v560_v9 = vld [vmem:[%s2946_s16 + $0x98] sm:$0xff] }
  0x4c   : > { %551 = vst [vmem:[%s2951_s17 + $0x60] sm:$0xff] %v550_v4  ;;  %553 = vst [vmem:[%s2951_s17 + $0x68] sm:$0xff] %v552_v5  ;;  %v562_v10 = vld [vmem:[%s2946_s16 + $0xa8] sm:$0xff]  ;;  %v564_v11 = vld [vmem:[%s2946_s16 + $0xb0] sm:$0xff] }
  0x4d   : > { %555 = vst [vmem:[%s2951_s17 + $0x78] sm:$0xff] %v554_v6  ;;  %557 = vst [vmem:[%s2951_s17 + $0x80] sm:$0xff] %v556_v7  ;;  %v566_v12 = vld [vmem:[%s2946_s16 + $0xc0] sm:$0xff]  ;;  %v568_v13 = vld [vmem:[%s2946_s16 + $0xc8] sm:$0xff] }
  0x4e   : > { %559 = vst [vmem:[%s2951_s17 + $0x90] sm:$0xff] %v558_v8  ;;  %561 = vst [vmem:[%s2951_s17 + $0x98] sm:$0xff] %v560_v9  ;;  %v570_v14 = vld [vmem:[%s2946_s16 + $0xd8] sm:$0xff]  ;;  %v572_v15 = vld [vmem:[%s2946_s16 + $0xe0] sm:$0xff] }
  0x4f   : > { %563 = vst [vmem:[%s2951_s17 + $0xa8] sm:$0xff] %v562_v10  ;;  %565 = vst [vmem:[%s2951_s17 + $0xb0] sm:$0xff] %v564_v11  ;;  %v574_v16 = vld [vmem:[%s2946_s16 + $0xf0] sm:$0xff]  ;;  %v576_v17 = vld [vmem:[%s2946_s16 + $0xf8] sm:$0xff] }
  0x50   : > { %567 = vst [vmem:[%s2951_s17 + $0xc0] sm:$0xff] %v566_v12  ;;  %569 = vst [vmem:[%s2951_s17 + $0xc8] sm:$0xff] %v568_v13  ;;  %v578_v18 = vld [vmem:[%s2946_s16 + $0x108] sm:$0xff]  ;;  %v580_v19 = vld [vmem:[%s2946_s16 + $0x110] sm:$0xff] }
  0x51   : > { %571 = vst [vmem:[%s2951_s17 + $0xd8] sm:$0xff] %v570_v14  ;;  %573 = vst [vmem:[%s2951_s17 + $0xe0] sm:$0xff] %v572_v15  ;;  %v582_v20 = vld [vmem:[%s2946_s16 + $0x120] sm:$0xff]  ;;  %v584_v21 = vld [vmem:[%s2946_s16 + $0x128] sm:$0xff] }
  0x52   : > { %575 = vst [vmem:[%s2951_s17 + $0xf0] sm:$0xff] %v574_v16  ;;  %577 = vst [vmem:[%s2951_s17 + $0xf8] sm:$0xff] %v576_v17  ;;  %v586_v22 = vld [vmem:[%s2946_s16 + $0x138] sm:$0xff]  ;;  %v588_v23 = vld [vmem:[%s2946_s16 + $0x140] sm:$0xff] }
  0x53   : > { %579 = vst [vmem:[%s2951_s17 + $0x108] sm:$0xff] %v578_v18  ;;  %581 = vst [vmem:[%s2951_s17 + $0x110] sm:$0xff] %v580_v19  ;;  %v590_v24 = vld [vmem:[%s2946_s16 + $0x150] sm:$0xff]  ;;  %v592_v25 = vld [vmem:[%s2946_s16 + $0x158] sm:$0xff] }
  0x54   : > { %583 = vst [vmem:[%s2951_s17 + $0x120] sm:$0xff] %v582_v20  ;;  %585 = vst [vmem:[%s2951_s17 + $0x128] sm:$0xff] %v584_v21  ;;  %v594_v26 = vld [vmem:[%s2946_s16 + $0x168] sm:$0xff]  ;;  %v596_v27 = vld [vmem:[%s2946_s16 + $0x170] sm:$0xff] }
  0x55   : > { %587 = vst [vmem:[%s2951_s17 + $0x138] sm:$0xff] %v586_v22  ;;  %589 = vst [vmem:[%s2951_s17 + $0x140] sm:$0xff] %v588_v23  ;;  %v598_v28 = vld [vmem:[%s2946_s16 + $0x180] sm:$0xff]  ;;  %v600_v29 = vld [vmem:[%s2946_s16 + $0x188] sm:$0xff] }
  0x56   : > { %591 = vst [vmem:[%s2951_s17 + $0x150] sm:$0xff] %v590_v24  ;;  %593 = vst [vmem:[%s2951_s17 + $0x158] sm:$0xff] %v592_v25  ;;  %v602_v30 = vld [vmem:[%s2946_s16 + $0x198] sm:$0xff]  ;;  %v604_v31 = vld [vmem:[%s2946_s16 + $0x1a0] sm:$0xff] }
  0x57   : > { %595 = vst [vmem:[%s2951_s17 + $0x168] sm:$0xff] %v594_v26  ;;  %597 = vst [vmem:[%s2951_s17 + $0x170] sm:$0xff] %v596_v27  ;;  %v606_v32 = vld [vmem:[%s2946_s16 + $0x1b0] sm:$0xff]  ;;  %v608_v33 = vld [vmem:[%s2946_s16 + $0x1b8] sm:$0xff] }
  0x58   : > { %599 = vst [vmem:[%s2951_s17 + $0x180] sm:$0xff] %v598_v28  ;;  %601 = vst [vmem:[%s2951_s17 + $0x188] sm:$0xff] %v600_v29  ;;  %v610_v34 = vld [vmem:[%s2946_s16 + $0x1c8] sm:$0xff]  ;;  %v612_v35 = vld [vmem:[%s2946_s16 + $0x1d0] sm:$0xff] }
  0x59   : > { %603 = vst [vmem:[%s2951_s17 + $0x198] sm:$0xff] %v602_v30  ;;  %605 = vst [vmem:[%s2951_s17 + $0x1a0] sm:$0xff] %v604_v31  ;;  %v2133_v36 = vld [vmem:[%s2946_s16 + $0x10] sm:$0xf]  ;;  %v2135_v37 = vld [vmem:[%s2946_s16 + $0x28] sm:$0xf] }
  0x5a   : > { %607 = vst [vmem:[%s2951_s17 + $0x1b0] sm:$0xff] %v606_v32  ;;  %609 = vst [vmem:[%s2951_s17 + $0x1b8] sm:$0xff] %v608_v33  ;;  %v2137_v38 = vld [vmem:[%s2946_s16 + $0x40] sm:$0xf]  ;;  %v2139_v39 = vld [vmem:[%s2946_s16 + $0x58] sm:$0xf] }
  0x5b   : > { %611 = vst [vmem:[%s2951_s17 + $0x1c8] sm:$0xff] %v610_v34  ;;  %613 = vst [vmem:[%s2951_s17 + $0x1d0] sm:$0xff] %v612_v35  ;;  %v2141_v40 = vld [vmem:[%s2946_s16 + $0x70] sm:$0xf]  ;;  %v2143_v41 = vld [vmem:[%s2946_s16 + $0x88] sm:$0xf] }
  0x5c   : > { %2134 = vst [vmem:[%s2951_s17 + $0x10] sm:$0xf] %v2133_v36  ;;  %2136 = vst [vmem:[%s2951_s17 + $0x28] sm:$0xf] %v2135_v37  ;;  %v2145_v42 = vld [vmem:[%s2946_s16 + $0xa0] sm:$0xf] }
  0x5d   : > { %2138 = vst [vmem:[%s2951_s17 + $0x40] sm:$0xf] %v2137_v38  ;;  %2140 = vst [vmem:[%s2951_s17 + $0x58] sm:$0xf] %v2139_v39  ;;  %v2147_v43 = vld [vmem:[%s2946_s16 + $0xb8] sm:$0xf] }
  0x5e   : > { %2142 = vst [vmem:[%s2951_s17 + $0x70] sm:$0xf] %v2141_v40  ;;  %2144 = vst [vmem:[%s2951_s17 + $0x88] sm:$0xf] %v2143_v41  ;;  %v2149_v44 = vld [vmem:[%s2946_s16 + $0xd0] sm:$0xf] }
  0x5f   : > { %2146 = vst [vmem:[%s2951_s17 + $0xa0] sm:$0xf] %v2145_v42  ;;  %2148 = vst [vmem:[%s2951_s17 + $0xb8] sm:$0xf] %v2147_v43  ;;  %v2151_v45 = vld [vmem:[%s2946_s16 + $0xe8] sm:$0xf] }
  0x60   : > { %v2153_v46 = vld [vmem:[%s2946_s16 + $0x100] sm:$0xf]  ;;  %2150 = vst [vmem:[%s2951_s17 + $0xd0] sm:$0xf] %v2149_v44  ;;  %2152 = vst [vmem:[%s2951_s17 + $0xe8] sm:$0xf] %v2151_v45 }
  0x61   : > { %2154 = vst [vmem:[%s2951_s17 + $0x100] sm:$0xf] %v2153_v46  ;;  %v2155_v47 = vld [vmem:[%s2946_s16 + $0x118] sm:$0xf]  ;;  %v2157_v48 = vld [vmem:[%s2946_s16 + $0x130] sm:$0xf] }
  0x62   : > { %v2159_v49 = vld [vmem:[%s2946_s16 + $0x148] sm:$0xf]  ;;  %2156 = vst [vmem:[%s2951_s17 + $0x118] sm:$0xf] %v2155_v47  ;;  %2158 = vst [vmem:[%s2951_s17 + $0x130] sm:$0xf] %v2157_v48 }
  0x63   : > { %2160 = vst [vmem:[%s2951_s17 + $0x148] sm:$0xf] %v2159_v49  ;;  %v2161_v50 = vld [vmem:[%s2946_s16 + $0x160] sm:$0xf]  ;;  %v2163_v51 = vld [vmem:[%s2946_s16 + $0x178] sm:$0xf] }
  0x64   : > { %v2165_v52 = vld [vmem:[%s2946_s16 + $0x190] sm:$0xf]  ;;  %2162 = vst [vmem:[%s2951_s17 + $0x160] sm:$0xf] %v2161_v50  ;;  %2164 = vst [vmem:[%s2951_s17 + $0x178] sm:$0xf] %v2163_v51 }
  0x65   : > { %2166 = vst [vmem:[%s2951_s17 + $0x190] sm:$0xf] %v2165_v52  ;;  %v2167_v53 = vld [vmem:[%s2946_s16 + $0x1a8] sm:$0xf]  ;;  %v2169_v54 = vld [vmem:[%s2946_s16 + $0x1c0] sm:$0xf] }
  0x66   : > { %v2171_v55 = vld [vmem:[%s2946_s16 + $0x1d8] sm:$0xf]  ;;  %2168 = vst [vmem:[%s2951_s17 + $0x1a8] sm:$0xf] %v2167_v53  ;;  %2170 = vst [vmem:[%s2951_s17 + $0x1c0] sm:$0xf] %v2169_v54 }
  0x67   : > { %2172 = vst [vmem:[%s2951_s17 + $0x1d8] sm:$0xf] %v2171_v55 }
  0x68   : > { %666 = vsyncadd %s458_s24, 6400 }
  0x69 PF: > { %s667_s25 = smul.u32 480, %s4436_s13  ;;  %s669_s29 = scalar_lea.sflag [#allocation3], %s4436_s13 }
  0x6b   : > { %s3073_s27 = scalar_lea.vmem [#allocation2], %s667_s25 }
  0x6c   : > { %2680 = dma.done.wait %s669_s29, 6400 }
  0x6d   : > { %2681 = vsyncadd %s669_s29, 4294960896  ;;  %v2610_v56 = vld [vmem:[%s4242_s3] sm:$0xff]   ;;  %v2611_v57 = vld [vmem:[%s4242_s3 + $0x8] sm:$0xff]   ;;  %s2456_s24 = sshll.u32 %s2700_s21, 12  ;;  %s1959_s25 = sshll.u32 %s2807_s14, 4  ;;  %s4185_s25 = int_to_ptr.vmem [resolvable:$true] %s1959_s25 }
  0x6e   : > { %2489 = vmatprep.subr.bf16.mxu0 %v2610_v56  ;;  %2521 = vmatprep.subr.bf16.mxu1 %v2610_v56  ;;  %v2612_v58 = vld [vmem:[%s4242_s3 + $0x10] sm:$0xff]   ;;  %v2613_v59 = vld [vmem:[%s4242_s3 + $0x18] sm:$0xff]   ;;  %v3091_v60 = vld [vmem:[%s4240_s1] ss:$0 sm:$0xff]  ;;  %s4183_s10 = scalar_lea.hbm %s4244_s5, %s2456_s24  ;;  %s4193_s21 = scalar_lea.sflag [#allocation5], %s197_s7 }
  0x6f   : > { %2490 = vmatpush3.bf16.msra.mxu0 %v2610_v56  ;;  %2522 = vmatpush3.bf16.msra.mxu1 %v2610_v56  ;;  %v3096_v61 = vld [vmem:[%s4240_s1 + $0x1] ss:$0 sm:$0xff]  ;;  %v3106_v63 = vld [vmem:[%s4240_s1 + $0x2] ss:$0 sm:$0xff]  ;;  %v3111_v0 = vld [vmem:[%s4240_s1 + $0x3] ss:$0 sm:$0xff] }
  0x70   : > { %2491 = vmatprep.subr.bf16.mxu0 %v2611_v57  ;;  %2523 = vmatprep.subr.bf16.mxu1 %v2611_v57  ;;  %v3101_v62 = vld [vmem:[%s4242_s3 + $0x20] sm:$0xff]   ;;  %v702_v4 = vld [vmem:[%s3073_s27 + $0x8] sm:$0xff]  ;;  %v2176_v17 = vld [vmem:[%s3073_s27 + $0x30] sm:$0xff]  ;;  %s2628_s11 = scalar_lea.vmem %s4185_s25, 4096  ;;  %s2710_s12 = smov [#allocation4]  }
  0x71   : > { %v3116_v1 = vld [vmem:[%s4240_s1 + $0x4] ss:$0 sm:$0xff]  ;;  %v3121_v2 = vld [vmem:[%s4240_s1 + $0x5] ss:$0 sm:$0xff]  ;;  %v3128_v5 = vld [vmem:[%s4240_s1 + $0x6] ss:$0 sm:$0xff]  ;;  %v722_v7 = vmul.f32 %v3091_v60, %v702_v4  ;;  %v878_v21 = vmul.f32 %v3111_v0, %v2176_v17  ;;  %v3172_v26 = vmul.f32 %v2176_v17, %v3091_v60  ;;  %p2629_p1 = scmp.ne.s32.totalorder %s4185_s25, %s2628_s11 }
  0x72   : > { %v701_v3 = vld [vmem:[%s3073_s27] sm:$0xff]  ;;  %v754_v9 = vld [vmem:[%s3073_s27 + $0xa] sm:$0xff]  ;;  %v3143_v12 = vld [vmem:[%s4240_s1 + $0x8] ss:$0 sm:$0xff]  ;;  %s2632_s9 = sshll.u32 %s2710_s12, 4  ;;  %s2633_s9 = int_to_ptr.vmem [resolvable:$false] %s2632_s9 }
  0x73   : > { %2492 = vmatpush3.bf16.msra.mxu0 %v2611_v57  ;;  %2524 = vmatpush3.bf16.msra.mxu1 %v2611_v57  ;;  %v721_v6 = vmul.f32 %v3091_v60, %v701_v3  ;;  %v753_v8 = vld [vmem:[%s3073_s27 + $0x2] sm:$0xff]  ;;  %v774_v14 = vmul.f32 %v3096_v61, %v754_v9  ;;  %v806_v15 = vld [vmem:[%s3073_s27 + $0xc] sm:$0xff]  ;;  %v3151_v18 = vld [vmem:[%s3073_s27 + $0x38] sm:$0xff]  ;;  %p2630_p2 = pnand %p2629_p1, %p2783_p4  ;;  %s2634_s15 = scalar_lea.vmem %s2633_s9, 8192 }
  0x74   : > { %2493 = vmatprep.subr.bf16.mxu0 %v2612_v58  ;;  %2525 = vmatprep.subr.bf16.mxu1 %v2612_v58  ;;  %v805_v10 = vld [vmem:[%s3073_s27 + $0x4] sm:$0xff]  ;;  %v773_v13 = vmul.f32 %v3096_v61, %v753_v8  ;;  %v826_v20 = vmul.f32 %v3106_v63, %v806_v15  ;;  %v879_v22 = vmul.f32 %v3111_v0, %v3151_v18  ;;  %v3163_v23 = vld [vmem:[%s3073_s27 + $0x32] sm:$0xff]  ;;  %v3166_v24 = vld [vmem:[%s3073_s27 + $0x3a] sm:$0xff]  ;;  %p2635_p5 = scmp.lt.s32.totalorder %s4185_s25, %s2633_s9  ;;  %p2636_p6 = scmp.lt.s32.totalorder %s2634_s15, %s2628_s11 }
  0x75   : > { %v3138_v11 = vld [vmem:[%s4240_s1 + $0x7] ss:$0 sm:$0xff]  ;;  %v825_v16 = vmul.f32 %v3106_v63, %v805_v10  ;;  %v3156_v19 = vld [vmem:[%s4242_s3 + $0x28] sm:$0xff]   ;;  %v3169_v25 = vld [vmem:[%s3073_s27 + $0x34] sm:$0xff]  ;;  %v790_v28 = vadd.f32 %v774_v14, %v722_v7  ;;  %v930_v29 = vmul.f32 %v3116_v1, %v3163_v23  ;;  %v931_v33 = vmul.f32 %v3116_v1, %v3166_v24  ;;  %p2631_p3 = pneg %p2630_p2 }
  0x76   : > { %v789_v27 = vadd.f32 %v773_v13, %v721_v6  ;;  %v3177_v30 = vld [vmem:[%s3073_s27 + $0x3c] sm:$0xff]  ;;  %v3183_v32 = vld [vmem:[%s3073_s27 + $0x68] sm:$0xff]  ;;  %v982_v34 = vmul.f32 %v3121_v2, %v3169_v25  ;;  %v3244_v57 = vld [vmem:[%s3073_s27 + $0xf0] sm:$0xff]  ;;  %p2637_p7 = por %p2636_p6, %p2635_p5 }
  0x77   : > { %2494 = vmatpush3.bf16.msra.mxu0 %v2612_v58  ;;  %2526 = vmatpush3.bf16.msra.mxu1 %v2612_v58  ;;  %v3180_v31 = vld [vmem:[%s3073_s27 + $0x60] sm:$0xff]  ;;  %v983_v35 = vmul.f32 %v3121_v2, %v3177_v30  ;;  %v3197_v37 = vld [vmem:[%s3073_s27 + $0x6a] sm:$0xff]  ;;  %v842_v40 = vadd.f32 %v826_v20, %v790_v28  ;;  %v1036_v42 = vmul.f32 %v3128_v5, %v3183_v32  ;;  %v3247_v58 = vld [vmem:[%s3073_s27 + $0xf8] sm:$0xff] }
  0x78   : > { %2495 = vmatprep.subr.bf16.mxu0 %v2613_v59  ;;  %2527 = vmatprep.subr.bf16.mxu1 %v2613_v59  ;;  %v3194_v36 = vld [vmem:[%s3073_s27 + $0x62] sm:$0xff]  ;;  %v841_v39 = vadd.f32 %v825_v16, %v789_v27  ;;  %v1035_v41 = vmul.f32 %v3128_v5, %v3180_v31  ;;  %v3207_v43 = vld [vmem:[%s3073_s27 + $0x6c] sm:$0xff]  ;;  %v1088_v47 = vmul.f32 %v3138_v11, %v3197_v37  ;;  %v3268_v13 = vld [vmem:[%s3073_s27 + $0xfa] sm:$0xff]  ;;  %p2638_p9 = pnand %p2637_p7, %p2631_p3 }
  0x79   : > { %v3200_v38 = vld [vmem:[%s3073_s27 + $0x64] sm:$0xff]  ;;  %v1087_v46 = vmul.f32 %v3138_v11, %v3194_v36  ;;  %v3225_v49 = vmul.f32 %v3143_v12, %v3207_v43  ;;  %v895_v54 = vadd.f32 %v879_v22, %v842_v40  ;;  %v3241_v56 = vld [vmem:[%s3073_s27 + $0xcc] sm:$0xff]  ;;  %v1530_v16 = vmul.f32 %v3244_v57, %v3111_v0  ;;  %v3275_v20 = vld [vmem:[%s3073_s27 + $0xf4] sm:$0xff] }
  0x7a   : > { %v3210_v44 = vld [vmem:[%s3073_s27 + $0xc0] sm:$0xff]  ;;  %v3213_v45 = vld [vmem:[%s3073_s27 + $0xc8] sm:$0xff]  ;;  %v3221_v48 = vmul.f32 %v3143_v12, %v3200_v38  ;;  %v894_v53 = vadd.f32 %v878_v21, %v841_v39  ;;  %4321 = vst [vmem:[#allocation15_spill] sm:$0xff] %v3241_v56  ;;  %v3261_v6 = vld [vmem:[%s3073_s27 + $0xf2] sm:$0xff]  ;;  %v1482_v10 = vmul.f32 %v3241_v56, %v3106_v63  ;;  %v1531_v17 = vmul.f32 %v3247_v58, %v3111_v0 }
  0x7b   : > { %2496 = vmatpush3.bf16.msra.mxu0 %v2613_v59  ;;  %2528 = vmatpush3.bf16.msra.mxu1 %v2613_v59  ;;  %4316 = vst [vmem:[#allocation10_spill] sm:$0xff] %v3210_v44  ;;  %4317 = vst [vmem:[#allocation11_spill] sm:$0xff] %v3213_v45  ;;  %v3228_v50 = vld [vmem:[%s3073_s27 + $0xc2] sm:$0xff]  ;;  %v3231_v51 = vld [vmem:[%s3073_s27 + $0xca] sm:$0xff]  ;;  %v1385_v55 = vmul.f32 %v3210_v44, %v3091_v60  ;;  %v947_v8 = vadd.f32 %v931_v33, %v895_v54 }
  0x7c   : > { %2497 = vmatprep.subr.bf16.mxu0 %v3101_v62  ;;  %2529 = vmatprep.subr.bf16.mxu1 %v3101_v62  ;;  %4318 = vst [vmem:[#allocation12_spill] sm:$0xff] %v3228_v50  ;;  %4319 = vst [vmem:[#allocation13_spill] sm:$0xff] %v3231_v51  ;;  %v3234_v52 = vld [vmem:[%s3073_s27 + $0xc4] sm:$0xff]  ;;  %v2616_v59 = vld [vmem:[%s4242_s3 + $0x30] sm:$0xff]   ;;  %v1433_v3 = vmul.f32 %v3228_v50, %v3096_v61  ;;  %v1434_v4 = vmul.f32 %v3231_v51, %v3096_v61 }
  0x7d   : > { %4320 = vst [vmem:[#allocation14_spill] sm:$0xff] %v3234_v52  ;;  %v946_v7 = vadd.f32 %v930_v29, %v894_v53  ;;  %v1481_v9 = vmul.f32 %v3234_v52, %v3106_v63  ;;  %v3278_v21 = vld [vmem:[%s3073_s27 + $0xfc] sm:$0xff]  ;;  %v999_v27 = vadd.f32 %v983_v35, %v947_v8  ;;  %v1578_v28 = vmul.f32 %v3261_v6, %v3116_v1  ;;  %v3288_v33 = vld [vmem:[%s3073_s27 + $0x128] sm:$0xff] }
  0x7e   : > { %v1449_v14 = vadd.f32 %v1433_v3, %v1385_v55  ;;  %v3285_v29 = vld [vmem:[%s3073_s27 + $0x120] sm:$0xff]  ;;  %v2617_v39 = vld [vmem:[%s4242_s3 + $0x38] sm:$0xff]   ;;  %v1626_v55 = vmul.f32 %v3275_v20, %v3121_v2  ;;  %v3303_v3 = vld [vmem:[%s3073_s27 + $0x12a] sm:$0xff] }
  0x7f   : > { %2498 = vmatpush3.bf16.msra.mxu0 %v3101_v62  ;;  %2530 = vmatpush3.bf16.msra.mxu1 %v3101_v62  ;;  %v1386_v62 = vmul.f32 %v3213_v45, %v3091_v60  ;;  %v998_v22 = vadd.f32 %v982_v34, %v946_v7  ;;  %v1579_v34 = vmul.f32 %v3268_v13, %v3116_v1  ;;  %v3296_v35 = vld [vmem:[%s3073_s27 + $0x122] sm:$0xff]  ;;  %v3367_v45 = vld [vmem:[%s3073_s27 + $0x78] sm:$0xff] }
  0x80   : > { %2499 = vmatprep.subr.bf16.mxu0 %v3156_v19  ;;  %2531 = vmatprep.subr.bf16.mxu1 %v3156_v19  ;;  %v1497_v40 = vadd.f32 %v1481_v9, %v1449_v14  ;;  %v1052_v54 = vadd.f32 %v1036_v42, %v999_v27  ;;  %v1675_v8 = vmul.f32 %v3285_v29, %v3128_v5  ;;  %v3313_v42 = vld [vmem:[%s3073_s27 + $0x12c] sm:$0xff]  ;;  %v756_v56 = vld [vmem:[%s3073_s27 + $0x22] sm:$0xff] }
  0x81   : > { %v1450_v15 = vadd.f32 %v1434_v4, %v1386_v62  ;;  %v1051_v53 = vadd.f32 %v1035_v41, %v998_v22  ;;  %v1627_v62 = vmul.f32 %v3278_v21, %v3121_v2  ;;  %v1676_v9 = vmul.f32 %v3288_v33, %v3128_v5  ;;  %v3310_v41 = vld [vmem:[%s3073_s27 + $0x124] sm:$0xff]  ;;  %4322 = vst [vmem:[#allocation16_spill] sm:$0xff] %v3313_v42  ;;  %v3322_v22 = vld [vmem:[%s4241_s2] ss:$0 sm:$0xff] }
  0x82   : > { %v1546_v4 = vadd.f32 %v1530_v16, %v1497_v40  ;;  %v1104_v14 = vadd.f32 %v1088_v47, %v1052_v54  ;;  %v703_v16 = vld [vmem:[%s3073_s27 + $0x18] sm:$0xff]  ;;  %v1772_v54 = vmul.f32 %v3313_v42, %v3143_v12  ;;  %4329 = vst [vmem:[#allocation23_spill] sm:$0xff] %v3367_v45 }
  0x83   : > { %2500 = vmatpush3.bf16.msra.mxu0 %v3156_v19  ;;  %2532 = vmatpush3.bf16.msra.mxu1 %v3156_v19  ;;  %v1498_v19 = vadd.f32 %v1482_v10, %v1450_v15  ;;  %v1103_v10 = vadd.f32 %v1087_v46, %v1051_v53  ;;  %v1723_v15 = vmul.f32 %v3296_v35, %v3138_v11  ;;  %v755_v47 = vld [vmem:[%s3073_s27 + $0x1a] sm:$0xff] }
  0x84   : > { %2501 = vmatprep.subr.bf16.mxu0 %v2616_v59  ;;  %2533 = vmatprep.subr.bf16.mxu1 %v2616_v59  ;;  %v1594_v27 = vadd.f32 %v1578_v28, %v1546_v4  ;;  %v1724_v46 = vmul.f32 %v3303_v3, %v3138_v11  ;;  %v1771_v53 = vmul.f32 %v3310_v41, %v3143_v12  ;;  %v807_v52 = vld [vmem:[%s3073_s27 + $0x1c] sm:$0xff]  ;;  %v808_v4 = vld [vmem:[%s3073_s27 + $0x24] sm:$0xff] }
  0x85   : > { %v1547_v7 = vadd.f32 %v1531_v17, %v1498_v19  ;;  %v704_v17 = vld [vmem:[%s3073_s27 + $0x20] sm:$0xff]  ;;  %v1155_v40 = vadd.f32 %v3221_v48, %v1103_v10  ;;  %v1156_v19 = vadd.f32 %v3225_v49, %v1104_v14  ;;  %v3339_v49 = vld [vmem:[%s3073_s27 + $0x48] sm:$0xff]  ;;  %v3345_v14 = vld [vmem:[%s3073_s27 + $0x50] sm:$0xff] }
  0x86   : > { %v1642_v51 = vadd.f32 %v1626_v55, %v1594_v27  ;;  %v724_v48 = vmul.f32 %v3091_v60, %v704_v17  ;;  %4323 = vst [vmem:[#allocation17_spill] sm:$0xff] %v3339_v49  ;;  %v775_v55 = vmul.f32 %v3096_v61, %v755_v47  ;;  %4324 = vst [vmem:[#allocation18_spill] sm:$0xff] %v3345_v14 }
  0x87   : > { %2502 = vmatpush3.bf16.msra.mxu0 %v2616_v59  ;;  %2534 = vmatpush3.bf16.msra.mxu1 %v2616_v59  ;;  %v1595_v59 = vadd.f32 %v1579_v34, %v1547_v7  ;;  %v723_v34 = vmul.f32 %v3091_v60, %v703_v16  ;;  %v1177_v7 = vadd.f32 %v3322_v22, %v1155_v40  ;;  %v3356_v40 = vld [vmem:[%s3073_s27 + $0x4c] sm:$0xff] }
  0x88   : > { %2503 = vmatprep.subr.bf16.mxu0 %v2617_v39  ;;  %2535 = vmatprep.subr.bf16.mxu1 %v2617_v39  ;;  %v1178_v10 = vadd.f32 %v3322_v22, %v1156_v19  ;;  %v776_v17 = vmul.f32 %v3096_v61, %v756_v56  ;;  %v827_v27 = vmul.f32 %v3106_v63, %v807_v52 }
  0x89   : > { %v1643_v28 = vadd.f32 %v1627_v62, %v1595_v59  ;;  %v1691_v62 = vadd.f32 %v1675_v8, %v1642_v51  ;;  %v3350_v59 = vld [vmem:[%s3073_s27 + $0x4a] sm:$0xff]  ;;  %4327 = vst [vmem:[#allocation21_spill] sm:$0xff] %v3356_v40  ;;  %v791_v50 = vadd.f32 %v775_v55, %v723_v34  ;;  %v828_v47 = vmul.f32 %v3106_v63, %v808_v4  ;;  %v3362_v8 = vld [vmem:[%s3073_s27 + $0x54] sm:$0xff]  ;;  %v3370_v34 = vld [vmem:[%s3073_s27 + $0x80] sm:$0xff] }
  0x8a   : > { %4325 = vst [vmem:[#allocation19_spill] sm:$0xff] %v3350_v59  ;;  %v1193_v19 = vpack.c.bf16 %v1178_v10, %v1177_v7  ;;  %v880_v51 = vmul.f32 %v3111_v0, %v3339_v49  ;;  %4328 = vst [vmem:[#allocation22_spill] sm:$0xff] %v3362_v8  ;;  %v792_v52 = vadd.f32 %v776_v17, %v724_v48  ;;  %v3373_v7 = vld [vmem:[%s3073_s27 + $0x7a] sm:$0xff]  ;;  %v3382_v10 = vld [vmem:[%s3073_s27 + $0x82] sm:$0xff] }
  0x8b   : > { %2504 = vmatpush3.bf16.msra.mxu0 %v2617_v39  ;;  %2536 = vmatpush3.bf16.msra.mxu1 %v2617_v39  ;;  %v1692_v16 = vadd.f32 %v1676_v9, %v1643_v28  ;;  %v3353_v39 = vld [vmem:[%s3073_s27 + $0x52] sm:$0xff]  ;;  %v1739_v56 = vadd.f32 %v1723_v15, %v1691_v62  ;;  %v881_v28 = vmul.f32 %v3111_v0, %v3345_v14  ;;  %v3387_v17 = vld [vmem:[%s3073_s27 + $0x7c] sm:$0xff] }
  0x8c   : > { %4326 = vst [vmem:[#allocation20_spill] sm:$0xff] %v3353_v39  ;;  %4330 = vst [vmem:[#allocation24_spill] sm:$0xff] %v3370_v34  ;;  %2505 = vmatprep.mubr.bf16.mxu0 %v1193_v19  ;;  %v843_v4 = vadd.f32 %v827_v27, %v791_v50  ;;  %v932_v15 = vmul.f32 %v3116_v1, %v3350_v59  ;;  %v984_v48 = vmul.f32 %v3121_v2, %v3356_v40  ;;  %v3390_v27 = vld [vmem:[%s3073_s27 + $0x84] sm:$0xff]  ;;  %v3393_v19 = vld [vmem:[%s3073_s27 + $0xd8] sm:$0xff] }
  0x8d   : > { %v1740_v9 = vadd.f32 %v1724_v46, %v1692_v16  ;;  %4331 = vst [vmem:[#allocation25_spill] sm:$0xff] %v3373_v7  ;;  %v933_v46 = vmul.f32 %v3116_v1, %v3353_v39  ;;  %4332 = vst [vmem:[#allocation26_spill] sm:$0xff] %v3382_v10  ;;  %v1787_v55 = vadd.f32 %v1771_v53, %v1739_v56  ;;  %v3405_v56 = vld [vmem:[%s3073_s27 + $0xda] sm:$0xff] }
  0x8e   : > { %v844_v16 = vadd.f32 %v828_v47, %v792_v52  ;;  %v985_v50 = vmul.f32 %v3121_v2, %v3362_v8  ;;  %4333 = vst [vmem:[#allocation27_spill] sm:$0xff] %v3387_v17  ;;  %4334 = vst [vmem:[#allocation28_spill] sm:$0xff] %v3390_v27  ;;  %v896_v44 = vadd.f32 %v880_v51, %v843_v4  ;;  %v3402_v47 = vld [vmem:[%s3073_s27 + $0xe0] sm:$0xff] }
  0x8f   : > { %v1788_v62 = vadd.f32 %v1772_v54, %v1740_v9  ;;  %4335 = vst [vmem:[#allocation29_spill] sm:$0xff] %v3393_v19  ;;  %v1037_v40 = vmul.f32 %v3128_v5, %v3367_v45  ;;  %v1038_v53 = vmul.f32 %v3128_v5, %v3370_v34  ;;  %v1089_v54 = vmul.f32 %v3138_v11, %v3373_v7  ;;  %v3412_v45 = vld [vmem:[%s3073_s27 + $0xe2] sm:$0xff] }
  0x90   : > { %4336 = vst [vmem:[#allocation30_spill] sm:$0xff] %v3402_v47  ;;  %4337 = vst [vmem:[#allocation31_spill] sm:$0xff] %v3405_v56  ;;  %v1803_v9 = vadd.f32 %v3322_v22, %v1787_v55  ;;  %v897_v51 = vadd.f32 %v881_v28, %v844_v16  ;;  %v1090_v4 = vmul.f32 %v3138_v11, %v3382_v10  ;;  %v3415_v34 = vld [vmem:[%s3073_s27 + $0xdc] sm:$0xff]  ;;  %v3418_v8 = vld [vmem:[%s3073_s27 + $0xe4] sm:$0xff] }
  0x91   : > { %v1804_v52 = vadd.f32 %v3322_v22, %v1788_v62  ;;  %4338 = vst [vmem:[#allocation32_spill] sm:$0xff] %v3412_v45  ;;  %4339 = vst [vmem:[#allocation33_spill] sm:$0xff] %v3415_v34  ;;  %v948_v7 = vadd.f32 %v932_v15, %v896_v44  ;;  %v1141_v39 = vmul.f32 %v3143_v12, %v3387_v17  ;;  %v3427_v62 = vld [vmem:[%s3073_s27 + $0x108] sm:$0xff]  ;;  %v3430_v16 = vld [vmem:[%s3073_s27 + $0x110] sm:$0xff] }
  0x92   : > { %4340 = vst [vmem:[#allocation34_spill] sm:$0xff] %v3418_v8  ;;  %v1142_v55 = vmul.f32 %v3143_v12, %v3390_v27  ;;  %v1387_v28 = vmul.f32 %v3393_v19, %v3091_v60  ;;  %4341 = vst [vmem:[#allocation35_spill] sm:$0xff] %v3427_v62  ;;  %v949_v59 = vadd.f32 %v933_v46, %v897_v51  ;;  %v3437_v17 = vld [vmem:[%s3073_s27 + $0x10a] sm:$0xff]  ;;  %v3440_v27 = vld [vmem:[%s3073_s27 + $0x112] sm:$0xff] }
  0x93   : > { %4342 = vst [vmem:[#allocation36_spill] sm:$0xff] %v3430_v16  ;;  %v1819_v10 = vpack.c.bf16 %v1804_v52, %v1803_v9  ;;  %v1388_v44 = vmul.f32 %v3402_v47, %v3091_v60  ;;  %v1435_v15 = vmul.f32 %v3405_v56, %v3096_v61  ;;  %4343 = vst [vmem:[#allocation37_spill] sm:$0xff] %v3437_v17  ;;  %v3449_v52 = vld [vmem:[%s3073_s27 + $0x10c] sm:$0xff]  ;;  %v3452_v51 = vld [vmem:[%s3073_s27 + $0x114] sm:$0xff] }
  0x94   : > { %4344 = vst [vmem:[#allocation38_spill] sm:$0xff] %v3440_v27  ;;  %v1000_v14 = vadd.f32 %v984_v48, %v948_v7  ;;  %v1436_v19 = vmul.f32 %v3412_v45, %v3096_v61  ;;  %v1483_v46 = vmul.f32 %v3415_v34, %v3106_v63  ;;  %v1484_v9 = vmul.f32 %v3418_v8, %v3106_v63  ;;  %v3459_v34 = vld [vmem:[%s3073_s27 + $0x138] sm:$0xff]  ;;  %v3462_v45 = vld [vmem:[%s3073_s27 + $0x140] sm:$0xff] }
  0x95   : > { %4345 = vst [vmem:[#allocation39_spill] sm:$0xff] %v3449_v52  ;;  %4346 = vst [vmem:[#allocation40_spill] sm:$0xff] %v3452_v51  ;;  %2537 = vmatprep.mubr.bf16.mxu1 %v1819_v10  ;;  %v1001_v56 = vadd.f32 %v985_v50, %v949_v59  ;;  %v1451_v47 = vadd.f32 %v1435_v15, %v1387_v28  ;;  %v1532_v7 = vmul.f32 %v3427_v62, %v3111_v0  ;;  %v3469_v10 = vld [vmem:[%s3073_s27 + $0x13a] sm:$0xff]  ;;  %v3472_v50 = vld [vmem:[%s3073_s27 + $0x142] sm:$0xff] }
  0x96   : > { %v1533_v48 = vmul.f32 %v3430_v16, %v3111_v0  ;;  %v1053_v8 = vadd.f32 %v1037_v40, %v1000_v14  ;;  %v1452_v49 = vadd.f32 %v1436_v19, %v1388_v44  ;;  %v1580_v42 = vmul.f32 %v3437_v17, %v3116_v1  ;;  %v3479_v14 = vld [vmem:[%s3073_s27 + $0x13c] sm:$0xff]  ;;  %v3482_v40 = vld [vmem:[%s3073_s27 + $0x144] sm:$0xff] }
  0x97   : > { %v1581_v59 = vmul.f32 %v3440_v27, %v3116_v1  ;;  %v1054_v28 = vadd.f32 %v1038_v53, %v1001_v56  ;;  %v1499_v15 = vadd.f32 %v1483_v46, %v1451_v47  ;;  %v1628_v16 = vmul.f32 %v3449_v52, %v3121_v2  ;;  %4347 = vst [vmem:[#allocation41_spill] sm:$0xff] %v3479_v14 }
  0x98   : > { %v1629_v62 = vmul.f32 %v3452_v51, %v3121_v2  ;;  %4348 = vst [vmem:[#allocation42_spill] sm:$0xff] %v3482_v40  ;;  %v1105_v19 = vadd.f32 %v1089_v54, %v1053_v8  ;;  %v1500_v44 = vadd.f32 %v1484_v9, %v1452_v49  ;;  %v1677_v27 = vmul.f32 %v3459_v34, %v3128_v5 }
  0x99   : > { %v1678_v17 = vmul.f32 %v3462_v45, %v3128_v5  ;;  %v1106_v53 = vadd.f32 %v1090_v4, %v1054_v28  ;;  %v1548_v47 = vadd.f32 %v1532_v7, %v1499_v15  ;;  %v1725_v56 = vmul.f32 %v3469_v10, %v3138_v11 }
  0x9a   : > { %v1726_v46 = vmul.f32 %v3472_v50, %v3138_v11  ;;  %v1157_v51 = vadd.f32 %v1141_v39, %v1105_v19  ;;  %v1549_v52 = vadd.f32 %v1533_v48, %v1500_v44  ;;  %v1773_v8 = vmul.f32 %v3479_v14, %v3143_v12 }
  0x9b   : > { %v1774_v49 = vmul.f32 %v3482_v40, %v3143_v12  ;;  %v1158_v54 = vadd.f32 %v1142_v55, %v1106_v53  ;;  %v1596_v9 = vadd.f32 %v1580_v42, %v1548_v47  ;;  %v726_v4 = vmul.f32 %v3151_v18, %v3091_v60 }
  0x9c   : > { %v777_v7 = vmul.f32 %v3163_v23, %v3096_v61  ;;  %v1179_v28 = vadd.f32 %v3322_v22, %v1157_v51  ;;  %v1597_v15 = vadd.f32 %v1581_v59, %v1549_v52  ;;  %v778_v39 = vmul.f32 %v3166_v24, %v3096_v61  ;;  %v3514_v59 = vld [vmem:[%s3073_s27 + $0x90] sm:$0xff] }
  0x9d   : > { %v829_v48 = vmul.f32 %v3169_v25, %v3106_v63  ;;  %v1180_v55 = vadd.f32 %v3322_v22, %v1158_v54  ;;  %v1644_v42 = vadd.f32 %v1628_v16, %v1596_v9  ;;  %v830_v18 = vmul.f32 %v3177_v30, %v3106_v63  ;;  %v3519_v30 = vld [vmem:[%s3073_s27 + $0x98] sm:$0xff] }
  0x9e   : > { %v793_v19 = vadd.f32 %v777_v7, %v3172_v26  ;;  %v1645_v23 = vadd.f32 %v1629_v62, %v1597_v15  ;;  %v794_v52 = vadd.f32 %v778_v39, %v726_v4  ;;  %v882_v51 = vmul.f32 %v3180_v31, %v3111_v0  ;;  %v3522_v62 = vld [vmem:[%s3073_s27 + $0x92] sm:$0xff]  ;;  %v3529_v4 = vld [vmem:[%s3073_s27 + $0x9a] sm:$0xff] }
  0x9f   : > { %v883_v24 = vmul.f32 %v3183_v32, %v3111_v0  ;;  %v1194_v25 = vpack.c.bf16 %v1180_v55, %v1179_v28  ;;  %v1693_v44 = vadd.f32 %v1677_v27, %v1644_v42  ;;  %v934_v26 = vmul.f32 %v3194_v36, %v3116_v1  ;;  %v3532_v27 = vld [vmem:[%s3073_s27 + $0x94] sm:$0xff]  ;;  %v3539_v39 = vld [vmem:[%s3073_s27 + $0x9c] sm:$0xff] }
  0xa0   : > { %v845_v16 = vadd.f32 %v829_v48, %v793_v19  ;;  %v1694_v53 = vadd.f32 %v1678_v17, %v1645_v23  ;;  %v846_v47 = vadd.f32 %v830_v18, %v794_v52  ;;  %v935_v54 = vmul.f32 %v3197_v37, %v3116_v1 }
  0xa1   : > { %v986_v9 = vmul.f32 %v3200_v38, %v3121_v2  ;;  %2506 = vmatmul.mubr.bf16.vlgmr.msra.gmra.mrb[0].mxu0 %v1194_v25  ;;  %v1741_v7 = vadd.f32 %v1725_v56, %v1693_v44  ;;  %v987_v15 = vmul.f32 %v3207_v43, %v3121_v2  ;;  %v1039_v17 = vmul.f32 %v3128_v5, %v3514_v59 }
  0xa2   : > { %v898_v28 = vadd.f32 %v882_v51, %v845_v16  ;;  %v1742_v48 = vadd.f32 %v1726_v46, %v1694_v53  ;;  %v899_v55 = vadd.f32 %v883_v24, %v846_v47  ;;  %v1040_v42 = vmul.f32 %v3128_v5, %v3519_v30 }
  0xa3   : > { %v1091_v19 = vmul.f32 %v3138_v11, %v3522_v62  ;;  %v1789_v18 = vadd.f32 %v1773_v8, %v1741_v7  ;;  %v1092_v56 = vmul.f32 %v3138_v11, %v3529_v4  ;;  %v1143_v52 = vmul.f32 %v3143_v12, %v3532_v27 }
  0xa4   : > { %v950_v23 = vadd.f32 %v934_v26, %v898_v28  ;;  %v1790_v51 = vadd.f32 %v1774_v49, %v1742_v48  ;;  %v951_v25 = vadd.f32 %v935_v54, %v899_v55  ;;  %v1144_v46 = vmul.f32 %v3143_v12, %v3539_v39  ;;  %v3570_v48 = vld [vmem:[%s3073_s27 + $0x150] sm:$0xff] }
  0xa5   : > { %v1389_v24 = vmul.f32 %v3244_v57, %v3091_v60  ;;  %v1805_v44 = vadd.f32 %v3322_v22, %v1789_v18  ;;  %v1390_v8 = vmul.f32 %v3247_v58, %v3091_v60  ;;  %v1437_v26 = vmul.f32 %v3261_v6, %v3096_v61  ;;  %4349 = vst [vmem:[#allocation43_spill] sm:$0xff] %v3570_v48 }
  0xa6   : > { %v1002_v16 = vadd.f32 %v986_v9, %v950_v23  ;;  %v1806_v49 = vadd.f32 %v3322_v22, %v1790_v51  ;;  %v1003_v53 = vadd.f32 %v987_v15, %v951_v25  ;;  %v1438_v47 = vmul.f32 %v3268_v13, %v3096_v61  ;;  %v3580_v23 = vld [vmem:[%s3073_s27 + $0x152] sm:$0xff] }
  0xa7   : > { %v1485_v57 = vmul.f32 %v3275_v20, %v3106_v63  ;;  %v1453_v9 = vadd.f32 %v1437_v26, %v1389_v24  ;;  %v1486_v7 = vmul.f32 %v3278_v21, %v3106_v63  ;;  %v1534_v58 = vmul.f32 %v3285_v29, %v3111_v0  ;;  %v3573_v20 = vld [vmem:[%s3073_s27 + $0x158] sm:$0xff]  ;;  %4351 = vst [vmem:[#allocation45_spill] sm:$0xff] %v3580_v23 }
  0xa8   : > { %v1055_v54 = vadd.f32 %v1039_v17, %v1002_v16  ;;  %v1820_v6 = vpack.c.bf16 %v1806_v49, %v1805_v44  ;;  %v1056_v28 = vadd.f32 %v1040_v42, %v1003_v53  ;;  %v1454_v15 = vadd.f32 %v1438_v47, %v1390_v8  ;;  %4350 = vst [vmem:[#allocation44_spill] sm:$0xff] %v3573_v20  ;;  %v3583_v42 = vld [vmem:[%s3073_s27 + $0x15a] sm:$0xff]  ;;  %v4353_v44 = vld [vmem:[#allocation16_spill] sm:$0xff] }
  0xa9   : > { %v1535_v13 = vmul.f32 %v3288_v33, %v3111_v0  ;;  %v1501_v55 = vadd.f32 %v1485_v57, %v1453_v9  ;;  %v1582_v21 = vmul.f32 %v3296_v35, %v3116_v1  ;;  %v1583_v18 = vmul.f32 %v3303_v3, %v3116_v1  ;;  %4352 = vst [vmem:[#allocation46_spill] sm:$0xff] %v3583_v42  ;;  %v3590_v16 = vld [vmem:[%s3073_s27 + $0x154] sm:$0xff]  ;;  %v3593_v8 = vld [vmem:[%s3073_s27 + $0x15c] sm:$0xff] }
  0xaa   : > { %v1107_v17 = vadd.f32 %v1091_v19, %v1055_v54  ;;  %2538 = vmatmul.mubr.bf16.vlgmr.msra.gmra.mrb[0].mxu1 %v1820_v6  ;;  %v1108_v51 = vadd.f32 %v1092_v56, %v1056_v28  ;;  %v1502_v25 = vadd.f32 %v1486_v7, %v1454_v15  ;;  %v1630_v24 = vmul.f32 %v3310_v41, %v3121_v2  ;;  %v4356_v15 = vld [vmem:[#allocation17_spill] sm:$0xff] }
  0xab   : > { %v1631_v19 = vmul.f32 %v4353_v44, %v3121_v2  ;;  %4354 = vst [vmem:[#allocation47_spill] sm:$0xff] %v3590_v16  ;;  %4355 = vst [vmem:[#allocation48_spill] sm:$0xff] %v3593_v8  ;;  %v1550_v49 = vadd.f32 %v1534_v58, %v1501_v55  ;;  %v1679_v53 = vmul.f32 %v3570_v48, %v3128_v5  ;;  %v3646_v44 = vld [vmem:[%s3073_s27 + $0xac] sm:$0xff] }
  0xac   : > { %v1159_v26 = vadd.f32 %v1143_v52, %v1107_v17  ;;  %v1680_v47 = vmul.f32 %v3573_v20, %v3128_v5  ;;  %v1160_v56 = vadd.f32 %v1144_v46, %v1108_v51  ;;  %v1551_v57 = vadd.f32 %v1535_v13, %v1502_v25  ;;  %v4357_v17 = vld [vmem:[#allocation18_spill] sm:$0xff]  ;;  %v3626_v20 = vld [vmem:[%s3073_s27 + $0xa8] sm:$0xff] }
  0xad   : > { %v1727_v54 = vmul.f32 %v3580_v23, %v3138_v11  ;;  %v1728_v9 = vmul.f32 %v3583_v42, %v3138_v11  ;;  %v1598_v6 = vadd.f32 %v1582_v21, %v1550_v49  ;;  %v1775_v52 = vmul.f32 %v3590_v16, %v3143_v12  ;;  %v4358_v21 = vld [vmem:[#allocation19_spill] sm:$0xff]  ;;  %4364 = vst [vmem:[#allocation17_spill] sm:$0xff] %v3626_v20 }
  0xae   : > { %v1181_v7 = vadd.f32 %v3322_v22, %v1159_v26  ;;  %v1776_v58 = vmul.f32 %v3593_v8, %v3143_v12  ;;  %v1182_v28 = vadd.f32 %v3322_v22, %v1160_v56  ;;  %v1599_v46 = vadd.f32 %v1583_v18, %v1551_v57  ;;  %v4359_v26 = vld [vmem:[#allocation20_spill] sm:$0xff]  ;;  %v4360_v8 = vld [vmem:[#allocation21_spill] sm:$0xff]  ;;  %v4361_v57 = vld [vmem:[#allocation22_spill] sm:$0xff] }
  0xaf   : > { %v727_v13 = vmul.f32 %v4356_v15, %v3091_v60  ;;  %v728_v55 = vmul.f32 %v4357_v17, %v3091_v60  ;;  %v1646_v51 = vadd.f32 %v1630_v24, %v1598_v6  ;;  %v779_v25 = vmul.f32 %v4358_v21, %v3096_v61  ;;  %v4362_v42 = vld [vmem:[#allocation23_spill] sm:$0xff]  ;;  %v4363_v21 = vld [vmem:[#allocation24_spill] sm:$0xff]  ;;  %4372 = vst [vmem:[#allocation21_spill] sm:$0xff] %v3646_v44 }
  0xb0   : > { %v780_v49 = vmul.f32 %v4359_v26, %v3096_v61  ;;  %v831_v56 = vmul.f32 %v4360_v8, %v3106_v63  ;;  %v1195_v16 = vpack.c.bf16 %v1182_v28, %v1181_v7  ;;  %v1647_v18 = vadd.f32 %v1631_v19, %v1599_v46  ;;  %v3629_v8 = vld [vmem:[%s3073_s27 + $0xb0] sm:$0xff]  ;;  %v4367_v28 = vld [vmem:[#allocation25_spill] sm:$0xff] }
  0xb1   : > { %v832_v15 = vmul.f32 %v4361_v57, %v3106_v63  ;;  %v884_v23 = vmul.f32 %v4362_v42, %v3111_v0  ;;  %v1695_v17 = vadd.f32 %v1679_v53, %v1646_v51  ;;  %v795_v24 = vadd.f32 %v779_v25, %v727_v13  ;;  %4365 = vst [vmem:[#allocation18_spill] sm:$0xff] %v3629_v8  ;;  %v3632_v7 = vld [vmem:[%s3073_s27 + $0xaa] sm:$0xff]  ;;  %v4368_v53 = vld [vmem:[#allocation26_spill] sm:$0xff]  ;;  %v3641_v25 = vld [vmem:[%s3073_s27 + $0xb2] sm:$0xff] }
  0xb2   : > { %v796_v6 = vadd.f32 %v780_v49, %v728_v55  ;;  %v885_v26 = vmul.f32 %v4363_v21, %v3111_v0  ;;  %4366 = vst [vmem:[#allocation19_spill] sm:$0xff] %v3632_v7  ;;  %2509 = vmatprep.mubr.bf16.mxu0 %v1195_v16  ;;  %v1696_v19 = vadd.f32 %v1680_v47, %v1647_v18  ;;  %v4369_v55 = vld [vmem:[#allocation27_spill] sm:$0xff]  ;;  %4370 = vst [vmem:[#allocation20_spill] sm:$0xff] %v3641_v25  ;;  %v4371_v42 = vld [vmem:[#allocation28_spill] sm:$0xff] }
  0xb3   : > { %v936_v46 = vmul.f32 %v4367_v28, %v3116_v1  ;;  %v937_v13 = vmul.f32 %v4368_v53, %v3116_v1  ;;  %v988_v51 = vmul.f32 %v4369_v55, %v3121_v2  ;;  %v1743_v49 = vadd.f32 %v1727_v54, %v1695_v17  ;;  %v3649_v16 = vld [vmem:[%s3073_s27 + $0xb4] sm:$0xff] }
  0xb4   : > { %v847_v57 = vadd.f32 %v831_v56, %v795_v24  ;;  %v848_v21 = vadd.f32 %v832_v15, %v796_v6  ;;  %v989_v48 = vmul.f32 %v4371_v42, %v3121_v2  ;;  %4373 = vst [vmem:[#allocation22_spill] sm:$0xff] %v3649_v16  ;;  %v1744_v47 = vadd.f32 %v1728_v9, %v1696_v19  ;;  %v4374_v19 = vld [vmem:[#allocation35_spill] sm:$0xff] }
  0xb5   : > { %v1041_v18 = vmul.f32 %v3128_v5, %v3626_v20  ;;  %v1042_v53 = vmul.f32 %v3128_v5, %v3629_v8  ;;  %v1093_v55 = vmul.f32 %v3138_v11, %v3632_v7  ;;  %v1791_v54 = vadd.f32 %v1775_v52, %v1743_v49  ;;  %v4375_v52 = vld [vmem:[#allocation36_spill] sm:$0xff] }
  0xb6   : > { %v900_v56 = vadd.f32 %v884_v23, %v847_v57  ;;  %v901_v15 = vadd.f32 %v885_v26, %v848_v21  ;;  %v1094_v17 = vmul.f32 %v3138_v11, %v3641_v25  ;;  %v1792_v24 = vadd.f32 %v1776_v58, %v1744_v47  ;;  %v4376_v26 = vld [vmem:[#allocation37_spill] sm:$0xff]  ;;  %v4377_v57 = vld [vmem:[#allocation38_spill] sm:$0xff] }
  0xb7   : > { %v1145_v6 = vmul.f32 %v3143_v12, %v3646_v44  ;;  %v1146_v9 = vmul.f32 %v3143_v12, %v3649_v16  ;;  %v1391_v20 = vmul.f32 %v4374_v19, %v3091_v60  ;;  %v1807_v8 = vadd.f32 %v3322_v22, %v1791_v54  ;;  %v4378_v16 = vld [vmem:[#allocation39_spill] sm:$0xff] }
  0xb8   : > { %v952_v7 = vadd.f32 %v936_v46, %v900_v56  ;;  %v953_v23 = vadd.f32 %v937_v13, %v901_v15  ;;  %v1392_v21 = vmul.f32 %v4375_v52, %v3091_v60  ;;  %v1808_v58 = vadd.f32 %v3322_v22, %v1792_v24  ;;  %v4379_v13 = vld [vmem:[#allocation40_spill] sm:$0xff]  ;;  %v3682_v44 = vld [vmem:[%s3073_s27 + $0x168] sm:$0xff] }
  0xb9   : > { %v1439_v49 = vmul.f32 %v4376_v26, %v3096_v61  ;;  %v1440_v47 = vmul.f32 %v4377_v57, %v3096_v61  ;;  %v1487_v19 = vmul.f32 %v4378_v16, %v3106_v63  ;;  %v1488_v56 = vmul.f32 %v4379_v13, %v3106_v63  ;;  %v3685_v16 = vld [vmem:[%s3073_s27 + $0x170] sm:$0xff] }
  0xba   : > { %v1004_v54 = vadd.f32 %v988_v51, %v952_v7  ;;  %v1005_v46 = vadd.f32 %v989_v48, %v953_v23  ;;  %v1536_v15 = vmul.f32 %v3459_v34, %v3111_v0  ;;  %v1821_v24 = vpack.c.bf16 %v1808_v58, %v1807_v8  ;;  %v3692_v8 = vld [vmem:[%s3073_s27 + $0x16a] sm:$0xff] }
  0xbb   : > { %v1455_v52 = vadd.f32 %v1439_v49, %v1391_v20  ;;  %v1456_v26 = vadd.f32 %v1440_v47, %v1392_v21  ;;  %v1537_v57 = vmul.f32 %v3462_v45, %v3111_v0  ;;  %v1584_v51 = vmul.f32 %v3469_v10, %v3116_v1  ;;  %v3695_v20 = vld [vmem:[%s3073_s27 + $0x172] sm:$0xff] }
  0xbc   : > { %v1057_v7 = vadd.f32 %v1041_v18, %v1004_v54  ;;  %v1058_v48 = vadd.f32 %v1042_v53, %v1005_v46  ;;  %v1585_v23 = vmul.f32 %v3472_v50, %v3116_v1  ;;  %2541 = vmatprep.mubr.bf16.mxu1 %v1821_v24  ;;  %v1632_v49 = vmul.f32 %v3479_v14, %v3121_v2  ;;  %v3702_v53 = vld [vmem:[%s3073_s27 + $0x16c] sm:$0xff]  ;;  %v3705_v47 = vld [vmem:[%s3073_s27 + $0x174] sm:$0xff] }
  0xbd   : > { %v1503_v21 = vadd.f32 %v1487_v19, %v1455_v52  ;;  %v1504_v58 = vadd.f32 %v1488_v56, %v1456_v26  ;;  %v1633_v18 = vmul.f32 %v3482_v40, %v3121_v2  ;;  %4380 = vst [vmem:[#allocation25_spill] sm:$0xff] %v3705_v47  ;;  %v1681_v13 = vmul.f32 %v3682_v44, %v3128_v5 }
  0xbe   : > { %v1109_v54 = vadd.f32 %v1093_v55, %v1057_v7  ;;  %v1110_v46 = vadd.f32 %v1094_v17, %v1058_v48  ;;  %v1682_v24 = vmul.f32 %v3685_v16, %v3128_v5  ;;  %v1729_v52 = vmul.f32 %v3692_v8, %v3138_v11 }
  0xbf   : > { %v1552_v19 = vadd.f32 %v1536_v15, %v1503_v21  ;;  %v1553_v56 = vadd.f32 %v1537_v57, %v1504_v58  ;;  %v1730_v26 = vmul.f32 %v3695_v20, %v3138_v11  ;;  %v1777_v55 = vmul.f32 %v3702_v53, %v3143_v12 }
  0xc0   : > { %v1161_v40 = vadd.f32 %v1145_v6, %v1109_v54  ;;  %v1162_v14 = vadd.f32 %v1146_v9, %v1110_v46  ;;  %v1778_v17 = vmul.f32 %v3705_v47, %v3143_v12  ;;  %v729_v15 = vmul.f32 %v3180_v31, %v3091_v60 }
  0xc1   : > { %v1600_v7 = vadd.f32 %v1584_v51, %v1552_v19  ;;  %v1601_v48 = vadd.f32 %v1585_v23, %v1553_v56  ;;  %v730_v57 = vmul.f32 %v3183_v32, %v3091_v60  ;;  %v781_v6 = vmul.f32 %v3194_v36, %v3096_v61 }
  0xc2   : > { %v1183_v21 = vadd.f32 %v3322_v22, %v1161_v40  ;;  %v1184_v58 = vadd.f32 %v3322_v22, %v1162_v14  ;;  %v782_v9 = vmul.f32 %v3197_v37, %v3096_v61  ;;  %v833_v51 = vmul.f32 %v3200_v38, %v3106_v63 }
  0xc3   : > { %v1648_v54 = vadd.f32 %v1632_v49, %v1600_v7  ;;  %v1649_v46 = vadd.f32 %v1633_v18, %v1601_v48  ;;  %v834_v31 = vmul.f32 %v3207_v43, %v3106_v63  ;;  %v797_v32 = vadd.f32 %v781_v6, %v729_v15 }
  0xc4   : > { %v1196_v23 = vpack.c.bf16 %v1184_v58, %v1183_v21  ;;  %v798_v19 = vadd.f32 %v782_v9, %v730_v57  ;;  %v886_v14 = vmul.f32 %v3514_v59, %v3111_v0  ;;  %v887_v36 = vmul.f32 %v3519_v30, %v3111_v0  ;;  %v4382_v58 = vld [vmem:[#allocation11_spill] sm:$0xff]  ;;  %v4383_v9 = vld [vmem:[#allocation12_spill] sm:$0xff] }
  0xc5   : > { %v1697_v40 = vadd.f32 %v1681_v13, %v1648_v54  ;;  %v1698_v56 = vadd.f32 %v1682_v24, %v1649_v46  ;;  %v938_v37 = vmul.f32 %v3522_v62, %v3116_v1  ;;  %v849_v49 = vadd.f32 %v833_v51, %v797_v32  ;;  %v4381_v24 = vld [vmem:[#allocation10_spill] sm:$0xff] }
  0xc6   : > { %2510 = vmatmul.mubr.bf16.gmra.mrb[4].mxu0 %v1196_v23  ;;  %v850_v38 = vadd.f32 %v834_v31, %v798_v19  ;;  %v939_v43 = vmul.f32 %v3529_v4, %v3116_v1  ;;  %v990_v18 = vmul.f32 %v3532_v27, %v3121_v2  ;;  %v991_v13 = vmul.f32 %v3539_v39, %v3121_v2  ;;  %v4384_v31 = vld [vmem:[#allocation13_spill] sm:$0xff] }
  0xc7   : > { %v1745_v7 = vadd.f32 %v1729_v52, %v1697_v40  ;;  %v1746_v48 = vadd.f32 %v1730_v26, %v1698_v56  ;;  %v1043_v15 = vmul.f32 %v4381_v24, %v3128_v5  ;;  %v902_v57 = vadd.f32 %v886_v14, %v849_v49  ;;  %v4385_v26 = vld [vmem:[#allocation14_spill] sm:$0xff]  ;;  %v4386_v40 = vld [vmem:[#allocation15_spill] sm:$0xff]  ;;  %v4387_v24 = vld [vmem:[#allocation16_spill] sm:$0xff] }
  0xc8   : > { %v903_v21 = vadd.f32 %v887_v36, %v850_v38  ;;  %v1044_v6 = vmul.f32 %v4382_v58, %v3128_v5  ;;  %v1095_v54 = vmul.f32 %v4383_v9, %v3138_v11  ;;  %v1096_v52 = vmul.f32 %v4384_v31, %v3138_v11  ;;  %v4390_v31 = vld [vmem:[#allocation45_spill] sm:$0xff] }
  0xc9   : > { %v1793_v46 = vadd.f32 %v1777_v55, %v1745_v7  ;;  %v1794_v51 = vadd.f32 %v1778_v17, %v1746_v48  ;;  %v1147_v23 = vmul.f32 %v4385_v26, %v3143_v12  ;;  %v954_v32 = vadd.f32 %v938_v37, %v902_v57 }
  0xca   : > { %v955_v19 = vadd.f32 %v939_v43, %v903_v21  ;;  %v1148_v14 = vmul.f32 %v4386_v40, %v3143_v12  ;;  %v1393_v56 = vmul.f32 %v3285_v29, %v3091_v60  ;;  %v1394_v17 = vmul.f32 %v3288_v33, %v3091_v60  ;;  %v4388_v33 = vld [vmem:[#allocation43_spill] sm:$0xff] }
  0xcb   : > { %v1809_v36 = vadd.f32 %v3322_v22, %v1793_v46  ;;  %v1810_v55 = vadd.f32 %v3322_v22, %v1794_v51  ;;  %v1441_v37 = vmul.f32 %v3296_v35, %v3096_v61  ;;  %v1006_v49 = vadd.f32 %v990_v18, %v954_v32  ;;  %v4389_v18 = vld [vmem:[#allocation44_spill] sm:$0xff]  ;;  %v3782_v46 = vld [vmem:[%s3073_s27 + $0x182] sm:$0xff] }
  0xcc   : > { %v1007_v38 = vadd.f32 %v991_v13, %v955_v19  ;;  %v1442_v43 = vmul.f32 %v3303_v3, %v3096_v61  ;;  %v1489_v29 = vmul.f32 %v3310_v41, %v3106_v63  ;;  %v1490_v57 = vmul.f32 %v4387_v24, %v3106_v63  ;;  %v3776_v13 = vld [vmem:[%s3073_s27 + $0x180] sm:$0xff]  ;;  %v3779_v41 = vld [vmem:[%s3073_s27 + $0x188] sm:$0xff] }
  0xcd   : > { %v1822_v7 = vpack.c.bf16 %v1810_v55, %v1809_v36  ;;  %v1457_v48 = vadd.f32 %v1441_v37, %v1393_v56  ;;  %v1538_v21 = vmul.f32 %v4388_v33, %v3111_v0  ;;  %v1059_v58 = vadd.f32 %v1043_v15, %v1006_v49  ;;  %v4391_v15 = vld [vmem:[#allocation46_spill] sm:$0xff]  ;;  %v4392_v32 = vld [vmem:[#allocation47_spill] sm:$0xff] }
  0xce   : > { %v1060_v9 = vadd.f32 %v1044_v6, %v1007_v38  ;;  %v1458_v35 = vadd.f32 %v1442_v43, %v1394_v17  ;;  %v1539_v3 = vmul.f32 %v4389_v18, %v3111_v0  ;;  %v1586_v26 = vmul.f32 %v4390_v31, %v3116_v1  ;;  %v3791_v40 = vld [vmem:[%s3073_s27 + $0x18a] sm:$0xff] }
  0xcf   : > { %2542 = vmatmul.mubr.bf16.gmra.mrb[4].mxu1 %v1822_v7  ;;  %v1505_v51 = vadd.f32 %v1489_v29, %v1457_v48  ;;  %v1587_v6 = vmul.f32 %v4391_v15, %v3116_v1  ;;  %v1634_v19 = vmul.f32 %v4392_v32, %v3121_v2  ;;  %v1111_v56 = vadd.f32 %v1095_v54, %v1059_v58  ;;  %v4393_v17 = vld [vmem:[#allocation48_spill] sm:$0xff]  ;;  %v3796_v49 = vld [vmem:[%s3073_s27 + $0x184] sm:$0xff] }
  0xd0   : > { %v1112_v36 = vadd.f32 %v1096_v52, %v1060_v9  ;;  %v1506_v55 = vadd.f32 %v1490_v57, %v1458_v35  ;;  %v1635_v37 = vmul.f32 %v4393_v17, %v3121_v2  ;;  %v3799_v38 = vld [vmem:[%s3073_s27 + $0x18c] sm:$0xff]  ;;  %v1683_v29 = vmul.f32 %v3776_v13, %v3128_v5 }
  0xd1   : > { %v1554_v43 = vadd.f32 %v1538_v21, %v1505_v51  ;;  %v1684_v1 = vmul.f32 %v3779_v41, %v3128_v5  ;;  %v1731_v7 = vmul.f32 %v3782_v46, %v3138_v11  ;;  %v1163_v54 = vadd.f32 %v1147_v23, %v1111_v56  ;;  %v4394_v58 = vld [vmem:[#allocation23_spill] sm:$0xff]  ;;  %v4396_v56 = vld [vmem:[#allocation26_spill] sm:$0xff] }
  0xd2   : > { %v1164_v52 = vadd.f32 %v1148_v14, %v1112_v36  ;;  %v1555_v48 = vadd.f32 %v1539_v3, %v1506_v55  ;;  %v1732_v2 = vmul.f32 %v3791_v40, %v3138_v11  ;;  %v1779_v57 = vmul.f32 %v3796_v49, %v3143_v12  ;;  %v4395_v14 = vld [vmem:[#allocation24_spill] sm:$0xff] }
  0xd3   : > { %v1602_v24 = vadd.f32 %v1586_v26, %v1554_v43  ;;  %v1780_v21 = vmul.f32 %v3799_v38, %v3143_v12  ;;  %v731_v9 = vmul.f32 %v4394_v58, %v3091_v60  ;;  %v1185_v5 = vadd.f32 %v3322_v22, %v1163_v54  ;;  %v4397_v12 = vld [vmem:[#allocation27_spill] sm:$0xff] }
  0xd4   : > { %v1186_v35 = vadd.f32 %v3322_v22, %v1164_v52  ;;  %v1603_v23 = vadd.f32 %v1587_v6, %v1555_v48  ;;  %v732_v3 = vmul.f32 %v4395_v14, %v3091_v60  ;;  %v783_v26 = vmul.f32 %v4367_v28, %v3096_v61  ;;  %v4398_v6 = vld [vmem:[#allocation17_spill] sm:$0xff]  ;;  %v3832_v28 = vld [vmem:[%s4240_s1 + $0x3] ss:$0 sm:$0xff] }
  0xd5   : > { %v1650_v51 = vadd.f32 %v1634_v19, %v1602_v24  ;;  %v784_v36 = vmul.f32 %v4396_v56, %v3096_v61  ;;  %v835_v55 = vmul.f32 %v4397_v12, %v3106_v63  ;;  %v836_v54 = vmul.f32 %v4371_v42, %v3106_v63  ;;  %v4399_v61 = vld [vmem:[#allocation18_spill] sm:$0xff]  ;;  %v4400_v42 = vld [vmem:[#allocation19_spill] sm:$0xff] }
  0xd6   : > { %v1197_v43 = vpack.c.bf16 %v1186_v35, %v1185_v5  ;;  %v1651_v58 = vadd.f32 %v1635_v37, %v1603_v23  ;;  %v888_v52 = vmul.f32 %v4398_v6, %v3111_v0  ;;  %v799_v60 = vadd.f32 %v783_v26, %v731_v9  ;;  %v3839_v63 = vld [vmem:[%s4240_s1 + $0x4] ss:$0 sm:$0xff]  ;;  %v4401_v9 = vld [vmem:[#allocation21_spill] sm:$0xff]  ;;  %v3857_v56 = vld [vmem:[%s4240_s1 + $0x6] ss:$0 sm:$0xff] }
  0xd7   : > { %v1699_v48 = vadd.f32 %v1683_v29, %v1650_v51  ;;  %v800_v19 = vadd.f32 %v784_v36, %v732_v3  ;;  %v889_v24 = vmul.f32 %v3832_v28, %v4399_v61  ;;  %v940_v0 = vmul.f32 %v3839_v63, %v4400_v42  ;;  %v3848_v29 = vld [vmem:[%s4240_s1 + $0x5] ss:$0 sm:$0xff]  ;;  %v4403_v36 = vld [vmem:[#allocation29_spill] sm:$0xff] }
  0xd8   : > { %2513 = vmatprep.mubr.bf16.mxu0 %v1197_v43  ;;  %v1700_v5 = vadd.f32 %v1684_v1, %v1651_v58  ;;  %v941_v37 = vmul.f32 %v3839_v63, %v3641_v25  ;;  %v992_v35 = vmul.f32 %v3848_v29, %v4401_v9  ;;  %v851_v23 = vadd.f32 %v835_v55, %v799_v60  ;;  %v4402_v3 = vld [vmem:[#allocation22_spill] sm:$0xff]  ;;  %v4405_v9 = vld [vmem:[#allocation31_spill] sm:$0xff]  ;;  %v4406_v60 = vld [vmem:[#allocation32_spill] sm:$0xff] }
  0xd9   : > { %v1747_v1 = vadd.f32 %v1731_v7, %v1699_v48  ;;  %v852_v14 = vadd.f32 %v836_v54, %v800_v19  ;;  %v993_v51 = vmul.f32 %v3848_v29, %v4402_v3  ;;  %v1045_v12 = vmul.f32 %v3857_v56, %v4403_v36  ;;  %v4404_v43 = vld [vmem:[#allocation30_spill] sm:$0xff]  ;;  %v3875_v36 = vld [vmem:[%s4240_s1 + $0x8] ss:$0 sm:$0xff]  ;;  %v3915_v42 = vld [vmem:[%s3073_s27 + $0x198] sm:$0xff] }
  0xda   : > { %v1748_v26 = vadd.f32 %v1732_v2, %v1700_v5  ;;  %v1046_v58 = vmul.f32 %v3857_v56, %v4404_v43  ;;  %v1097_v7 = vmul.f32 %v4405_v9, %v3138_v11  ;;  %v904_v54 = vadd.f32 %v888_v52, %v851_v23  ;;  %v3868_v2 = vld [vmem:[%s4240_s1 + $0x7] ss:$0 sm:$0xff]  ;;  %v4407_v43 = vld [vmem:[#allocation33_spill] sm:$0xff] }
  0xdb   : > { %v1795_v55 = vadd.f32 %v1779_v57, %v1747_v1  ;;  %v905_v48 = vadd.f32 %v889_v24, %v852_v14  ;;  %v1098_v19 = vmul.f32 %v3868_v2, %v4406_v60  ;;  %v1149_v11 = vmul.f32 %v3875_v36, %v4407_v43  ;;  %v4408_v57 = vld [vmem:[#allocation34_spill] sm:$0xff] }
  0xdc   : > { %v1796_v5 = vadd.f32 %v1780_v21, %v1748_v26  ;;  %v1150_v52 = vmul.f32 %v3875_v36, %v4408_v57  ;;  %v3884_v24 = vld [vmem:[%s4240_s1] ss:$0 sm:$0xff]  ;;  %v956_v1 = vadd.f32 %v940_v0, %v904_v54  ;;  %v3895_v60 = vld [vmem:[%s4240_s1 + $0x1] ss:$0 sm:$0xff]  ;;  %v3904_v0 = vld [vmem:[%s4240_s1 + $0x2] ss:$0 sm:$0xff]  ;;  %v1541_v25 = vmul.f32 %v3832_v28, %v3685_v16 }
  0xdd   : > { %v1395_v9 = vmul.f32 %v3884_v24, %v3459_v34  ;;  %v1811_v21 = vadd.f32 %v3322_v22, %v1795_v55  ;;  %v957_v23 = vadd.f32 %v941_v37, %v905_v48  ;;  %v1396_v14 = vmul.f32 %v3884_v24, %v3462_v45  ;;  %v4409_v45 = vld [vmem:[#allocation41_spill] sm:$0xff]  ;;  %v4410_v48 = vld [vmem:[#allocation42_spill] sm:$0xff] }
  0xde   : > { %v1812_v26 = vadd.f32 %v3322_v22, %v1796_v5  ;;  %v1443_v43 = vmul.f32 %v3895_v60, %v3469_v10  ;;  %v1444_v34 = vmul.f32 %v3895_v60, %v3472_v50  ;;  %v1491_v37 = vmul.f32 %v3904_v0, %v4409_v45  ;;  %v3918_v45 = vld [vmem:[%s3073_s27 + $0x1a0] sm:$0xff] }
  0xdf   : > { %v1008_v55 = vadd.f32 %v992_v35, %v956_v1  ;;  %v1009_v54 = vadd.f32 %v993_v51, %v957_v23  ;;  %v1492_v5 = vmul.f32 %v3904_v0, %v4410_v48  ;;  %v1540_v10 = vmul.f32 %v3832_v28, %v3682_v44  ;;  %4411 = vst [vmem:[#allocation28_spill] sm:$0xff] %v3918_v45 }
  0xe0   : > { %v1823_v57 = vpack.c.bf16 %v1812_v26, %v1811_v21  ;;  %v1459_v50 = vadd.f32 %v1443_v43, %v1395_v9  ;;  %v1460_v3 = vadd.f32 %v1444_v34, %v1396_v14  ;;  %v1588_v1 = vmul.f32 %v3839_v63, %v3692_v8  ;;  %v3925_v21 = vld [vmem:[%s3073_s27 + $0x19a] sm:$0xff]  ;;  %v3928_v9 = vld [vmem:[%s3073_s27 + $0x1a2] sm:$0xff] }
  0xe1   : > { %v1061_v35 = vadd.f32 %v1045_v12, %v1008_v55  ;;  %v1062_v51 = vadd.f32 %v1046_v58, %v1009_v54  ;;  %v1589_v23 = vmul.f32 %v3839_v63, %v3695_v20  ;;  %4412 = vst [vmem:[#allocation35_spill] sm:$0xff] %v3925_v21  ;;  %4413 = vst [vmem:[#allocation36_spill] sm:$0xff] %v3928_v9  ;;  %v3935_v58 = vld [vmem:[%s3073_s27 + $0x19c] sm:$0xff]  ;;  %v3938_v34 = vld [vmem:[%s3073_s27 + $0x1a4] sm:$0xff] }
  0xe2   : > { %2545 = vmatprep.mubr.bf16.mxu1 %v1823_v57  ;;  %v1507_v14 = vadd.f32 %v1491_v37, %v1459_v50  ;;  %v1508_v26 = vadd.f32 %v1492_v5, %v1460_v3  ;;  %v1636_v43 = vmul.f32 %v3848_v29, %v3702_v53  ;;  %v1637_v12 = vmul.f32 %v3848_v29, %v3705_v47 }
  0xe3   : > { %4414 = vst [vmem:[#allocation37_spill] sm:$0xff] %v3935_v58  ;;  %4415 = vst [vmem:[#allocation38_spill] sm:$0xff] %v3938_v34  ;;  %v1113_v55 = vadd.f32 %v1097_v7, %v1061_v35  ;;  %v1114_v54 = vadd.f32 %v1098_v19, %v1062_v51  ;;  %v1685_v48 = vmul.f32 %v3857_v56, %v3915_v42 }
  0xe4   : > { %v1686_v37 = vmul.f32 %v3857_v56, %v3918_v45  ;;  %v1556_v3 = vadd.f32 %v1540_v10, %v1507_v14  ;;  %v1557_v5 = vadd.f32 %v1541_v25, %v1508_v26  ;;  %v1733_v57 = vmul.f32 %v3868_v2, %v3925_v21  ;;  %v2188_v26 = vld [vmem:[%s3073_s27 + $0xc0] sm:$0xff]  ;;  %v2240_v21 = vld [vmem:[%s3073_s27 + $0xf8] sm:$0xff] }
  0xe5   : > { %v1734_v50 = vmul.f32 %v3868_v2, %v3928_v9  ;;  %v1165_v47 = vadd.f32 %v1149_v11, %v1113_v55  ;;  %v1166_v7 = vadd.f32 %v1150_v52, %v1114_v54  ;;  %v1781_v19 = vmul.f32 %v3875_v36, %v3935_v58  ;;  %v2205_v54 = vld [vmem:[%s3073_s27 + $0xc2] sm:$0xff]  ;;  %v2223_v9 = vld [vmem:[%s3073_s27 + $0xcc] sm:$0xff] }
  0xe6   : > { %v1782_v35 = vmul.f32 %v3875_v36, %v3938_v34  ;;  %v1604_v51 = vadd.f32 %v1588_v1, %v1556_v3  ;;  %v1605_v25 = vadd.f32 %v1589_v23, %v1557_v5  ;;  %v733_v10 = vmul.f32 %v3884_v24, %v3514_v59  ;;  %v2189_v23 = vld [vmem:[%s3073_s27 + $0xc8] sm:$0xff] }
  0xe7   : > { %v734_v14 = vmul.f32 %v3884_v24, %v3519_v30  ;;  %v1187_v11 = vadd.f32 %v3322_v22, %v1165_v47  ;;  %v1188_v52 = vadd.f32 %v3322_v22, %v1166_v7  ;;  %v785_v55 = vmul.f32 %v3895_v60, %v3522_v62  ;;  %v2206_v5 = vld [vmem:[%s3073_s27 + $0xca] sm:$0xff] }
  0xe8   : > { %v786_v1 = vmul.f32 %v3895_v60, %v3529_v4  ;;  %v1652_v3 = vadd.f32 %v1636_v43, %v1604_v51  ;;  %v1653_v59 = vadd.f32 %v1637_v12, %v1605_v25  ;;  %v837_v30 = vmul.f32 %v3904_v0, %v3532_v27  ;;  %v2222_v7 = vld [vmem:[%s3073_s27 + $0xc4] sm:$0xff]  ;;  %v2239_v43 = vld [vmem:[%s3073_s27 + $0xf0] sm:$0xff] }
  0xe9   : > { %v838_v47 = vmul.f32 %v3904_v0, %v3539_v39  ;;  %v1198_v34 = vpack.c.bf16 %v1188_v52, %v1187_v11  ;;  %v801_v58 = vadd.f32 %v785_v55, %v733_v10  ;;  %v890_v4 = vmul.f32 %v3832_v28, %v2188_v26  ;;  %v2256_v39 = vld [vmem:[%s3073_s27 + $0xf2] sm:$0xff]  ;;  %v2257_v52 = vld [vmem:[%s3073_s27 + $0xfa] sm:$0xff] }
  0xea   : > { %v802_v62 = vadd.f32 %v786_v1, %v734_v14  ;;  %v1701_v51 = vadd.f32 %v1685_v48, %v1652_v3  ;;  %v1702_v12 = vadd.f32 %v1686_v37, %v1653_v59  ;;  %v891_v25 = vmul.f32 %v3832_v28, %v2189_v23  ;;  %v2273_v26 = vld [vmem:[%s3073_s27 + $0xf4] sm:$0xff]  ;;  %v2274_v23 = vld [vmem:[%s3073_s27 + $0xfc] sm:$0xff] }
  0xeb   : > { %v942_v27 = vmul.f32 %v3839_v63, %v2205_v54  ;;  %2514 = vmatmul.mubr.bf16.gmra.mrb[8].mxu0 %v1198_v34  ;;  %v853_v45 = vadd.f32 %v837_v30, %v801_v58  ;;  %v943_v10 = vmul.f32 %v3839_v63, %v2206_v5  ;;  %v994_v14 = vmul.f32 %v3848_v29, %v2222_v7 }
  0xec   : > { %v854_v11 = vadd.f32 %v838_v47, %v802_v62  ;;  %v1749_v55 = vadd.f32 %v1733_v57, %v1701_v51  ;;  %v1750_v1 = vadd.f32 %v1734_v50, %v1702_v12  ;;  %v995_v48 = vmul.f32 %v3848_v29, %v2223_v9 }
  0xed   : > { %v1047_v37 = vmul.f32 %v3857_v56, %v2239_v43  ;;  %v906_v3 = vadd.f32 %v890_v4, %v853_v45  ;;  %v1048_v59 = vmul.f32 %v3857_v56, %v2240_v21  ;;  %v1099_v58 = vmul.f32 %v3868_v2, %v2256_v39  ;;  %v2396_v39 = vld [vmem:[%s3073_s27 + $0x1b0] sm:$0xff] }
  0xee   : > { %v907_v54 = vadd.f32 %v891_v25, %v854_v11  ;;  %v1797_v34 = vadd.f32 %v1781_v19, %v1749_v55  ;;  %v1798_v30 = vadd.f32 %v1782_v35, %v1750_v1  ;;  %v1100_v47 = vmul.f32 %v3868_v2, %v2257_v52  ;;  %v2397_v11 = vld [vmem:[%s3073_s27 + $0x1b8] sm:$0xff] }
  0xef   : > { %v1151_v5 = vmul.f32 %v3875_v36, %v2273_v26  ;;  %v958_v7 = vadd.f32 %v942_v27, %v906_v3  ;;  %v1152_v50 = vmul.f32 %v3875_v36, %v2274_v23  ;;  %v1397_v9 = vmul.f32 %v3884_v24, %v4388_v33  ;;  %v2413_v1 = vld [vmem:[%s3073_s27 + $0x1ba] sm:$0xff] }
  0xf0   : > { %v959_v57 = vadd.f32 %v943_v10, %v907_v54  ;;  %v1813_v45 = vadd.f32 %v3322_v22, %v1797_v34  ;;  %v1814_v21 = vadd.f32 %v3322_v22, %v1798_v30  ;;  %v1398_v19 = vmul.f32 %v3884_v24, %v4389_v18  ;;  %v2190_v30 = vld [vmem:[%s3073_s27 + $0xd8] sm:$0xff] }
  0xf1   : > { %v1445_v35 = vmul.f32 %v3895_v60, %v4390_v31  ;;  %v1010_v62 = vadd.f32 %v994_v14, %v958_v7  ;;  %v1446_v43 = vmul.f32 %v3895_v60, %v4391_v15  ;;  %v1493_v33 = vmul.f32 %v3904_v0, %v4392_v32  ;;  %v2412_v14 = vld [vmem:[%s3073_s27 + $0x1b2] sm:$0xff] }
  0xf2   : > { %v1011_v4 = vadd.f32 %v995_v48, %v959_v57  ;;  %v1824_v51 = vpack.c.bf16 %v1814_v21, %v1813_v45  ;;  %v1494_v22 = vmul.f32 %v3904_v0, %v4393_v17  ;;  %v1542_v18 = vmul.f32 %v3832_v28, %v3776_v13  ;;  %v4416_v21 = vld [vmem:[#allocation19_spill] sm:$0xff] }
  0xf3   : > { %v1461_v12 = vadd.f32 %v1445_v35, %v1397_v9  ;;  %v1063_v25 = vadd.f32 %v1047_v37, %v1010_v62  ;;  %v1462_v27 = vadd.f32 %v1446_v43, %v1398_v19  ;;  %v1543_v15 = vmul.f32 %v3832_v28, %v3779_v41  ;;  %v2428_v41 = vld [vmem:[%s3073_s27 + $0x1b4] sm:$0xff]  ;;  %v2191_v9 = vld [vmem:[%s3073_s27 + $0xe0] sm:$0xff] }
  0xf4   : > { %v1064_v31 = vadd.f32 %v1048_v59, %v1011_v4  ;;  %2546 = vmatmul.mubr.bf16.gmra.mrb[8].mxu1 %v1824_v51  ;;  %v1590_v10 = vmul.f32 %v3839_v63, %v3782_v46  ;;  %v1591_v17 = vmul.f32 %v3839_v63, %v3791_v40  ;;  %v1638_v55 = vmul.f32 %v3848_v29, %v3796_v49  ;;  %v4417_v35 = vld [vmem:[#allocation20_spill] sm:$0xff]  ;;  %v4418_v4 = vld [vmem:[#allocation21_spill] sm:$0xff] }
  0xf5   : > { %v1509_v32 = vadd.f32 %v1493_v33, %v1461_v12  ;;  %v1115_v13 = vadd.f32 %v1099_v58, %v1063_v25  ;;  %v1510_v26 = vadd.f32 %v1494_v22, %v1462_v27  ;;  %v1639_v37 = vmul.f32 %v3848_v29, %v3799_v38  ;;  %v2207_v33 = vld [vmem:[%s3073_s27 + $0xda] sm:$0xff]  ;;  %v2208_v25 = vld [vmem:[%s3073_s27 + $0xe2] sm:$0xff] }
  0xf6   : > { %v1116_v52 = vadd.f32 %v1100_v47, %v1064_v31  ;;  %v1687_v23 = vmul.f32 %v3857_v56, %v2396_v39  ;;  %v1688_v46 = vmul.f32 %v3857_v56, %v2397_v11  ;;  %v1735_v59 = vmul.f32 %v3868_v2, %v2412_v14  ;;  %v4032_v47 = vld [vmem:[%s4241_s2] ss:$0 sm:$0xff] }
  0xf7   : > { %v1558_v48 = vadd.f32 %v1542_v18, %v1509_v32  ;;  %v1167_v40 = vadd.f32 %v1151_v5, %v1115_v13  ;;  %v1559_v54 = vadd.f32 %v1543_v15, %v1510_v26  ;;  %v1736_v49 = vmul.f32 %v3868_v2, %v2413_v1  ;;  %v2224_v11 = vld [vmem:[%s3073_s27 + $0xdc] sm:$0xff]  ;;  %v2225_v32 = vld [vmem:[%s3073_s27 + $0xe4] sm:$0xff] }
  0xf8   : > { %v1168_v3 = vadd.f32 %v1152_v50, %v1116_v52  ;;  %v1783_v34 = vmul.f32 %v3875_v36, %v2428_v41  ;;  %v735_v38 = vmul.f32 %v3884_v24, %v4398_v6  ;;  %v736_v50 = vmul.f32 %v3884_v24, %v4399_v61  ;;  %v2429_v6 = vld [vmem:[%s3073_s27 + $0x1bc] sm:$0xff]  ;;  %v2242_v52 = vld [vmem:[%s3073_s27 + $0x110] sm:$0xff] }
  0xf9   : > { %v1606_v58 = vadd.f32 %v1590_v10, %v1558_v48  ;;  %v1189_v5 = vadd.f32 %v4032_v47, %v1167_v40  ;;  %v1607_v57 = vadd.f32 %v1591_v17, %v1559_v54  ;;  %v787_v19 = vmul.f32 %v3895_v60, %v4416_v21  ;;  %v4419_v61 = vld [vmem:[#allocation22_spill] sm:$0xff]  ;;  %v2241_v10 = vld [vmem:[%s3073_s27 + $0x108] sm:$0xff]  ;;  %v2276_v21 = vld [vmem:[%s3073_s27 + $0x114] sm:$0xff] }
  0xfa   : > { %v1190_v7 = vadd.f32 %v4032_v47, %v1168_v3  ;;  %v788_v62 = vmul.f32 %v3895_v60, %v4417_v35  ;;  %v839_v43 = vmul.f32 %v3904_v0, %v4418_v4  ;;  %v840_v22 = vmul.f32 %v3904_v0, %v4419_v61  ;;  %v2258_v48 = vld [vmem:[%s3073_s27 + $0x10a] sm:$0xff] }
  0xfb   : > { %v1654_v45 = vadd.f32 %v1638_v55, %v1606_v58  ;;  %v1655_v12 = vadd.f32 %v1639_v37, %v1607_v57  ;;  %v892_v18 = vmul.f32 %v3832_v28, %v2190_v30  ;;  %v803_v27 = vadd.f32 %v787_v19, %v735_v38  ;;  %v2259_v37 = vld [vmem:[%s3073_s27 + $0x112] sm:$0xff] }
  0xfc   : > { %v1199_v51 = vpack.c.bf16 %v1190_v7, %v1189_v5  ;;  %v804_v15 = vadd.f32 %v788_v62, %v736_v50  ;;  %v893_v39 = vmul.f32 %v3832_v28, %v2191_v9  ;;  %v1784_v14 = vmul.f32 %v3875_v36, %v2429_v6  ;;  %v2275_v6 = vld [vmem:[%s3073_s27 + $0x10c] sm:$0xff] }
  0xfd   : > { %v1703_v31 = vadd.f32 %v1687_v23, %v1654_v45  ;;  %v1704_v17 = vadd.f32 %v1688_v46, %v1655_v12  ;;  %v944_v13 = vmul.f32 %v3839_v63, %v2207_v33  ;;  %v855_v55 = vadd.f32 %v839_v43, %v803_v27  ;;  %v4420_v43 = vld [vmem:[#allocation25_spill] sm:$0xff] }
  0xfe   : > { %2517 = vmatprep.mubr.bf16.mxu0 %v1199_v51  ;;  %v856_v1 = vadd.f32 %v840_v22, %v804_v15  ;;  %v945_v41 = vmul.f32 %v3839_v63, %v2208_v25  ;;  %v996_v40 = vmul.f32 %v3848_v29, %v2224_v11  ;;  %v997_v3 = vmul.f32 %v3848_v29, %v2225_v32  ;;  %v2399_v11 = vld [vmem:[%s3073_s27 + $0x1d0] sm:$0xff] }
  0xff   : > { %v1751_v26 = vadd.f32 %v1735_v59, %v1703_v31  ;;  %v1752_v23 = vadd.f32 %v1736_v49, %v1704_v17  ;;  %v1049_v46 = vmul.f32 %v3857_v56, %v2241_v10  ;;  %v908_v58 = vadd.f32 %v892_v18, %v855_v55  ;;  %v4423_v31 = vld [vmem:[#allocation36_spill] sm:$0xff]  ;;  %v4424_v17 = vld [vmem:[#allocation37_spill] sm:$0xff] }
 0x100   : > { %v909_v38 = vadd.f32 %v893_v39, %v856_v1  ;;  %v1050_v59 = vmul.f32 %v3857_v56, %v2242_v52  ;;  %v1101_v5 = vmul.f32 %v3868_v2, %v2258_v48  ;;  %v1102_v7 = vmul.f32 %v3868_v2, %v2259_v37  ;;  %v2414_v1 = vld [vmem:[%s3073_s27 + $0x1ca] sm:$0xff] }
 0x101   : > { %v1799_v54 = vadd.f32 %v1783_v34, %v1751_v26  ;;  %v1800_v30 = vadd.f32 %v1784_v14, %v1752_v23  ;;  %v1399_v49 = vmul.f32 %v3884_v24, %v3682_v44  ;;  %v960_v50 = vadd.f32 %v944_v13, %v908_v58  ;;  %v4425_v13 = vld [vmem:[#allocation38_spill] sm:$0xff] }
 0x102   : > { %v961_v9 = vadd.f32 %v945_v41, %v909_v38  ;;  %v1400_v45 = vmul.f32 %v3884_v24, %v3685_v16  ;;  %v1447_v19 = vmul.f32 %v3895_v60, %v3692_v8  ;;  %v1448_v35 = vmul.f32 %v3895_v60, %v3695_v20  ;;  %v4421_v8 = vld [vmem:[#allocation28_spill] sm:$0xff] }
 0x103   : > { %v1815_v57 = vadd.f32 %v4032_v47, %v1799_v54  ;;  %v1816_v34 = vadd.f32 %v4032_v47, %v1800_v30  ;;  %v1495_v44 = vmul.f32 %v3904_v0, %v3702_v53  ;;  %v1012_v62 = vadd.f32 %v996_v40, %v960_v50  ;;  %v2415_v41 = vld [vmem:[%s3073_s27 + $0x1d2] sm:$0xff] }
 0x104   : > { %v1013_v4 = vadd.f32 %v997_v3, %v961_v9  ;;  %v1496_v33 = vmul.f32 %v3904_v0, %v4420_v43  ;;  %v1544_v16 = vmul.f32 %v3832_v28, %v3915_v42  ;;  %v1463_v51 = vadd.f32 %v1447_v19, %v1399_v49  ;;  %v4422_v42 = vld [vmem:[#allocation35_spill] sm:$0xff]  ;;  %v2431_v54 = vld [vmem:[%s3073_s27 + $0x1d4] sm:$0xff] }
 0x105   : > { %v1825_v24 = vpack.c.bf16 %v1816_v34, %v1815_v57  ;;  %v1464_v12 = vadd.f32 %v1448_v35, %v1400_v45  ;;  %v1545_v61 = vmul.f32 %v3832_v28, %v4421_v8  ;;  %v1065_v20 = vadd.f32 %v1049_v46, %v1012_v62  ;;  %v2398_v28 = vld [vmem:[%s3073_s27 + $0x1c8] sm:$0xff] }
 0x106   : > { %v1066_v60 = vadd.f32 %v1050_v59, %v1013_v4  ;;  %v1153_v53 = vmul.f32 %v3875_v36, %v2275_v6  ;;  %v1154_v22 = vmul.f32 %v3875_v36, %v2276_v21  ;;  %v1511_v0 = vadd.f32 %v1495_v44, %v1463_v51  ;;  %v2430_v46 = vld [vmem:[%s3073_s27 + $0x1cc] sm:$0xff]  ;;  %v4116_v21 = vld [vmem:[%s4243_s4] ss:$0 sm:$0xff] }
 0x107   : > { %2549 = vmatprep.mubr.bf16.mxu1 %v1825_v24  ;;  %v1512_v18 = vadd.f32 %v1496_v33, %v1464_v12  ;;  %v1592_v25 = vmul.f32 %v3839_v63, %v4422_v42  ;;  %v1593_v27 = vmul.f32 %v3839_v63, %v4423_v31  ;;  %v1117_v15 = vadd.f32 %v1101_v5, %v1065_v20 }
 0x108   : > { %v1118_v39 = vadd.f32 %v1102_v7, %v1066_v60  ;;  %v1560_v32 = vadd.f32 %v1544_v16, %v1511_v0  ;;  %v1640_v14 = vmul.f32 %v3848_v29, %v4424_v17  ;;  %v1641_v52 = vmul.f32 %v3848_v29, %v4425_v13 }
 0x109   : > { %v1561_v10 = vadd.f32 %v1545_v61, %v1512_v18  ;;  %v1169_v26 = vadd.f32 %v1153_v53, %v1117_v15  ;;  %v1689_v37 = vmul.f32 %v3857_v56, %v2398_v28  ;;  %v1690_v23 = vmul.f32 %v3857_v56, %v2399_v11 }
 0x10a   : > { %v1170_v55 = vadd.f32 %v1154_v22, %v1118_v39  ;;  %v1608_v48 = vadd.f32 %v1592_v25, %v1560_v32  ;;  %v1737_v29 = vmul.f32 %v3868_v2, %v2414_v1  ;;  %v1738_v59 = vmul.f32 %v3868_v2, %v2415_v41 }
 0x10b   : > { %v1609_v63 = vadd.f32 %v1593_v27, %v1561_v10  ;;  %v1191_v40 = vadd.f32 %v4032_v47, %v1169_v26  ;;  %v1785_v49 = vmul.f32 %v3875_v36, %v2430_v46  ;;  %v1786_v57 = vmul.f32 %v3875_v36, %v2431_v54 }
 0x10c   : > { %v1192_v3 = vadd.f32 %v4032_v47, %v1170_v55  ;;  %v1656_v58 = vadd.f32 %v1640_v14, %v1608_v48 }
 0x10d   : > { %v1657_v38 = vadd.f32 %v1641_v52, %v1609_v63 }
 0x10e   : > { %v1200_v30 = vpack.c.bf16 %v1192_v3, %v1191_v40  ;;  %v1705_v5 = vadd.f32 %v1689_v37, %v1656_v58 }
 0x10f   : > { %v1706_v7 = vadd.f32 %v1690_v23, %v1657_v38 }
 0x110   : > { %2518 = vmatmul.mubr.bf16.gmra.mrb[12].mxu0 %v1200_v30  ;;  %v1753_v56 = vadd.f32 %v1737_v29, %v1705_v5 }
 0x111   : > { %v1754_v50 = vadd.f32 %v1738_v59, %v1706_v7 }
 0x112   : > { %v1801_v9 = vadd.f32 %v1785_v49, %v1753_v56 }
 0x113   : > { %v1802_v45 = vadd.f32 %v1786_v57, %v1754_v50 }
 0x114   : > { %v1817_v34 = vadd.f32 %v4032_v47, %v1801_v9 }
 0x115   : > { %v1818_v2 = vadd.f32 %v4032_v47, %v1802_v45 }
 0x117   : > { %v1826_v6 = vpack.c.bf16 %v1818_v2, %v1817_v34 }
 0x119   : > { %2550 = vmatmul.mubr.bf16.gmra.mrb[12].mxu1 %v1826_v6 }
 0x174   : > { %v2507_v36 = vpop.f32.mrb[0].mxu0 }
 0x175   : > { %v1298_v19 = vadd.f32 %v2507_v36, %v4116_v21  ;;  %v1289_v35 = vpop.f32.mrb[1].mxu0 }
 0x176   : > { %v1290_v44 = vadd.f32 %v4116_v21, %v1289_v35  ;;  %v2508_v62 = vpop.f32.mrb[2].mxu0 }
 0x177   : > { %1354 = vst [vmem:[%s2807_s14 + $0x10] sm:$0xff] %v1298_v19  ;;  %v1301_v4 = vadd.f32 %v2508_v62, %v4116_v21  ;;  %v1292_v47 = vpop.f32.mrb[3].mxu0 }
 0x178   : > { %1352 = vst [vmem:[%s2807_s14] sm:$0xff] %v1290_v44  ;;  %v1293_v43 = vadd.f32 %v4116_v21, %v1292_v47 }
 0x179   : > { %1355 = vst [vmem:[%s2807_s14 + $0x18] sm:$0xff] %v1301_v4 }
 0x17a   : > { %1353 = vst [vmem:[%s2807_s14 + $0x8] sm:$0xff] %v1293_v43 }
 0x17d   : > { %v2539_v33 = vpop.f32.mrb[0].mxu1 }
 0x17e   : > { %v1870_v16 = vadd.f32 %v2539_v33, %v4116_v21  ;;  %v1861_v24 = vpop.f32.mrb[1].mxu1 }
 0x17f   : > { %v1862_v51 = vadd.f32 %v4116_v21, %v1861_v24  ;;  %v2540_v12 = vpop.f32.mrb[2].mxu1 }
 0x180   : > { %2434 = vst [vmem:[%s2807_s14 + $0x90] sm:$0xff] %v1870_v16  ;;  %v1873_v8 = vadd.f32 %v2540_v12, %v4116_v21  ;;  %v1864_v61 = vpop.f32.mrb[3].mxu1 }
 0x181   : > { %2432 = vst [vmem:[%s2807_s14 + $0x80] sm:$0xff] %v1862_v51  ;;  %v1865_v20 = vadd.f32 %v4116_v21, %v1864_v61 }
 0x182   : > { %2435 = vst [vmem:[%s2807_s14 + $0x98] sm:$0xff] %v1873_v8 }
 0x183   : > { %2433 = vst [vmem:[%s2807_s14 + $0x88] sm:$0xff] %v1865_v20 }
 0x199   : > { %v2511_v60 = vpop.f32.mrb[4].mxu0 }
 0x19a   : > { %v1314_v53 = vadd.f32 %v2511_v60, %v4116_v21  ;;  %v1305_v22 = vpop.f32.mrb[5].mxu0 }
 0x19b   : > { %v1306_v0 = vadd.f32 %v4116_v21, %v1305_v22  ;;  %v2512_v18 = vpop.f32.mrb[6].mxu0 }
 0x19c   : > { %1358 = vst [vmem:[%s2807_s14 + $0x30] sm:$0xff] %v1314_v53  ;;  %v1317_v42 = vadd.f32 %v2512_v18, %v4116_v21  ;;  %v1308_v25 = vpop.f32.mrb[7].mxu0 }
 0x19d   : > { %1356 = vst [vmem:[%s2807_s14 + $0x20] sm:$0xff] %v1306_v0  ;;  %v1309_v31 = vadd.f32 %v4116_v21, %v1308_v25 }
 0x19e   : > { %1359 = vst [vmem:[%s2807_s14 + $0x38] sm:$0xff] %v1317_v42 }
 0x19f   : > { %1357 = vst [vmem:[%s2807_s14 + $0x28] sm:$0xff] %v1309_v31 }
 0x1a2   : > { %v2543_v27 = vpop.f32.mrb[4].mxu1 }
 0x1a3   : > { %v1886_v15 = vadd.f32 %v2543_v27, %v4116_v21  ;;  %v1877_v39 = vpop.f32.mrb[5].mxu1 }
 0x1a4   : > { %v1878_v28 = vadd.f32 %v4116_v21, %v1877_v39  ;;  %v2544_v11 = vpop.f32.mrb[6].mxu1 }
 0x1a5   : > { %2438 = vst [vmem:[%s2807_s14 + $0xb0] sm:$0xff] %v1886_v15  ;;  %v1889_v32 = vadd.f32 %v2544_v11, %v4116_v21  ;;  %v1880_v10 = vpop.f32.mrb[7].mxu1 }
 0x1a6   : > { %2436 = vst [vmem:[%s2807_s14 + $0xa0] sm:$0xff] %v1878_v28  ;;  %v1881_v17 = vadd.f32 %v4116_v21, %v1880_v10 }
 0x1a7   : > { %2439 = vst [vmem:[%s2807_s14 + $0xb8] sm:$0xff] %v1889_v32 }
 0x1a8   : > { %2437 = vst [vmem:[%s2807_s14 + $0xa8] sm:$0xff] %v1881_v17 }
 0x1be   : > { %v2515_v14 = vpop.f32.mrb[8].mxu0 }
 0x1bf   : > { %v1330_v13 = vadd.f32 %v2515_v14, %v4116_v21  ;;  %v1321_v52 = vpop.f32.mrb[9].mxu0 }
 0x1c0   : > { %v1322_v26 = vadd.f32 %v4116_v21, %v1321_v52  ;;  %v2516_v55 = vpop.f32.mrb[10].mxu0 }
 0x1c1   : > { %1362 = vst [vmem:[%s2807_s14 + $0x50] sm:$0xff] %v1330_v13  ;;  %v1333_v1 = vadd.f32 %v2516_v55, %v4116_v21  ;;  %v1324_v41 = vpop.f32.mrb[11].mxu0 }
 0x1c2   : > { %1360 = vst [vmem:[%s2807_s14 + $0x40] sm:$0xff] %v1322_v26  ;;  %v1325_v48 = vadd.f32 %v4116_v21, %v1324_v41 }
 0x1c3   : > { %1363 = vst [vmem:[%s2807_s14 + $0x58] sm:$0xff] %v1333_v1 }
 0x1c4   : > { %1361 = vst [vmem:[%s2807_s14 + $0x48] sm:$0xff] %v1325_v48 }
 0x1c7   : > { %v2547_v63 = vpop.f32.mrb[8].mxu1 }
 0x1c8   : > { %v1902_v37 = vadd.f32 %v2547_v63, %v4116_v21  ;;  %v1893_v23 = vpop.f32.mrb[9].mxu1 }
 0x1c9   : > { %v1894_v40 = vadd.f32 %v4116_v21, %v1893_v23  ;;  %v2548_v3 = vpop.f32.mrb[10].mxu1 }
 0x1ca   : > { %2442 = vst [vmem:[%s2807_s14 + $0xd0] sm:$0xff] %v1902_v37  ;;  %v1905_v46 = vadd.f32 %v2548_v3, %v4116_v21  ;;  %v1896_v54 = vpop.f32.mrb[11].mxu1 }
 0x1cb   : > { %2440 = vst [vmem:[%s2807_s14 + $0xc0] sm:$0xff] %v1894_v40  ;;  %v1897_v58 = vadd.f32 %v4116_v21, %v1896_v54 }
 0x1cc   : > { %2443 = vst [vmem:[%s2807_s14 + $0xd8] sm:$0xff] %v1905_v46 }
 0x1cd   : > { %2441 = vst [vmem:[%s2807_s14 + $0xc8] sm:$0xff] %v1897_v58 }
 0x1e3   : > { %v2519_v38 = vpop.f32.mrb[12].mxu0 }
 0x1e4   : > { %v1346_v29 = vadd.f32 %v2519_v38, %v4116_v21  ;;  %v1337_v59 = vpop.f32.mrb[13].mxu0 }
 0x1e5   : > { %v1338_v30 = vadd.f32 %v4116_v21, %v1337_v59  ;;  %v2520_v5 = vpop.f32.mrb[14].mxu0 }
 0x1e6   : > { %1366 = vst [vmem:[%s2807_s14 + $0x70] sm:$0xff] %v1346_v29  ;;  %v1349_v7 = vadd.f32 %v2520_v5, %v4116_v21  ;;  %v1340_v49 = vpop.f32.mrb[15].mxu0 }
 0x1e7   : > { %1364 = vst [vmem:[%s2807_s14 + $0x60] sm:$0xff] %v1338_v30  ;;  %v1341_v57 = vadd.f32 %v4116_v21, %v1340_v49 }
 0x1e8   : > { %1367 = vst [vmem:[%s2807_s14 + $0x78] sm:$0xff] %v1349_v7 }
 0x1e9   : > { %1365 = vst [vmem:[%s2807_s14 + $0x68] sm:$0xff] %v1341_v57 }
 0x1ec   : > { %v2551_v56 = vpop.f32.mrb[12].mxu1 }
 0x1ed   : > { %v1918_v50 = vadd.f32 %v2551_v56, %v4116_v21  ;;  %v1909_v9 = vpop.f32.mrb[13].mxu1 }
 0x1ee   : > { %v1910_v45 = vadd.f32 %v4116_v21, %v1909_v9  ;;  %v2552_v34 = vpop.f32.mrb[14].mxu1 }
 0x1ef   : > { %2446 = vst [vmem:[%s2807_s14 + $0xf0] sm:$0xff] %v1918_v50  ;;  %v1921_v2 = vadd.f32 %v2552_v34, %v4116_v21  ;;  %v1912_v6 = vpop.f32.mrb[15].mxu1 }
 0x1f0   : > { %2444 = vst [vmem:[%s2807_s14 + $0xe0] sm:$0xff] %v1910_v45  ;;  %v1913_v36 = vadd.f32 %v4116_v21, %v1912_v6 }
 0x1f1   : > { %2447 = vst [vmem:[%s2807_s14 + $0xf8] sm:$0xff] %v1921_v2 }
 0x1f2   : > { %2445 = vst [vmem:[%s2807_s14 + $0xe8] sm:$0xff] %v1913_v36 }
 0x1f3   : > { %2641 = shalt.err (!%p2638_p9)
}
 0x1f4   : > { %s2642_s7 = scalar_lea.hbm %s4183_s10, 4096  ;;  %s2646_s16 = scalar_lea.hbm %s4244_s5, 8192 }
 0x1f5   : > { %p2643_p10 = scmp.ne.s32.totalorder %s4183_s10, %s2642_s7  ;;  %p2647_p13 = scmp.lt.u32.totalorder %s4183_s10, %s4244_s5 }
 0x1f6   : > { %p2648_p0 = scmp.lt.u32.totalorder %s2646_s16, %s2642_s7  ;;  %p2650_p2 = scmp.lt.u32.totalorder %s2642_s7, %s4183_s10 }
 0x1f7   : > { %p2644_p11 = pnand %p2643_p10, %p2783_p4 }
 0x1f8   : > { %p2649_p1 = por %p2648_p0, %p2647_p13 }
 0x1f9   : > { %p2645_p12 = pneg %p2644_p11 }
 0x1fa   : > { %p2651_p3 = por %p2650_p2, %p2649_p1 }
 0x1fc   : > { %p2652_p5 = pnand %p2651_p3, %p2645_p12 }
 0x1fe   : > { %2655 = shalt.err (!%p2652_p5)
}
 0x1ff   : > { %s2711_s24 = smov 128   ;;  %s2712_s29 = smov 8  }
 0x200   : > { %2553 = dma.vmem_to_hbm [thread:$0]  (%p2783_p4), %s4185_s25, 4096, %s4183_s10, %s4193_s21, %s2711_s24, %s2711_s24, %s2712_s29  }
 0x201 PF: > { %p2559_p6 = scmp.ge.s32.totalorder %s2708_s23, 2  ;;  %s1974_s8 = sand.u32 1, %s2688_s18  }
 0x202   : > { %s1975_s11 = scalar_lea.sflag [#allocation5], %s1974_s8 }
 0x203   : > { %p2556_p7 = pnand %p2559_p6, %p2790_p8 }
 0x205   : > { %2683 = dma.done.wait (!%p2556_p7), %s1975_s11, 4096  }
 0x206   : > { %2685 = vsyncadd (!%p2556_p7), %s1975_s11, 4294963200  ;;  %s18_s23 = sadd.s32 1, %s2708_s23   ;;  %s4426_s18 = smov %s2692_s19 }
 0x207   : > { %p15_p9 = scmp.ge.s32.totalorder %s18_s23, 4   ;;  %s4427_s19 = smov %s2696_s20 }
 0x208   : > { %s4428_s20 = smov %s2796_s6  ;;  %s4429_s21 = smov %s2704_s22 }
 0x209   : > { %s4430_s22 = smov %s4432_s26  ;;  %17 = sbr.rel (!%p15_p9) target bundleno = 4 (0x4), region = 193 }
 0x210   :  { %1980 = vsyncpa [#allocation5], 1 }
 0x211   :  { %1982 = vsyncpa [#allocation5 + $0x1], 1 }
 0x212   :  { %1983 = vsyncmov [#allocation3] }
 0x215   :  { %s1984_s28 = vpop.sfrf %1983 }
 0x216   :  { %p2453_p4 = scmp.ne.s32.totalorder %s1984_s28, 0 }
 0x218   :  { %1988 = shalt.err (%p2453_p4)  }
 0x219   :  { %1990 = vsyncmov [#allocation3 + $0x1] }
 0x21c   :  { %s1991_s30 = vpop.sfrf %1990 }
 0x21d   :  { %p2454_p8 = scmp.ne.s32.totalorder %s1991_s30, 0 }
 0x21f   :  { %1995 = shalt.err (%p2454_p8)  }

</bundles_post_ra>
